<compile_context>
chip_gen: v5e
topology: v5e:2x2
jax: 0.10.0
libtpu: 0.0.40
codegen_flags: <defaults>
</compile_context>

<pallas_src>
import functools

import jax
import jax.numpy as jnp
from jax.experimental import pallas as pl
from jax.experimental.pallas import tpu as pltpu


# ---------------------------------------------------------------------------
# Hardware-aware sizing helpers (VMEM: 128 MiB v5e/v6e, 64 MiB v7x)
# ---------------------------------------------------------------------------
def _vmem_capacity_bytes():
    try:
        return int(pltpu.get_tpu_info().vmem_capacity_bytes)
    except Exception:
        return 128 * 1024 * 1024


def _compiler_params():
    cap_mib = _vmem_capacity_bytes() // (2 ** 20)
    limit_mib = max(32, min(cap_mib // 2, 100))
    return pltpu.CompilerParams(
        dimension_semantics=("parallel",),
        vmem_limit_bytes=int(limit_mib * 2 ** 20),
    )


def _choose_m_tile(M, row_bytes):
    """Pick an M (row) tile from the per-chip VMEM budget; multiple of 8."""
    budget = _vmem_capacity_bytes() // 8          # headroom for double-buffering
    tm = budget // max(int(row_bytes), 1)
    tm = int(max(256, min(2048, tm)))
    if tm >= M:
        return M
    return max(8, (tm // 256) * 256)


def _cost(flops, arrays, out_bytes):
    nbytes = int(sum(a.size * a.dtype.itemsize for a in arrays)) + int(out_bytes)
    return pl.CostEstimate(flops=int(flops), transcendentals=0,
                           bytes_accessed=nbytes)


# ---------------------------------------------------------------------------
# In-kernel building blocks
# ---------------------------------------------------------------------------
def _conv1_to_padded(x, w1_ref, b1_ref, h1p_ref, H, W, c_mid):
    """h1 = relu(x @ w1 + b1); write zero-padded h1 (pad=1) into VMEM scratch."""
    h1 = jnp.dot(x, w1_ref[...], preferred_element_type=jnp.float32)
    h1 = jnp.maximum(h1 + b1_ref[...], 0.0)                      # (H*W, c_mid)
    # Re-zero the scratch (border ring acts as the conv padding), then write
    # the interior.  f32 scratch keeps the sub-lane-offset slicing robust.
    h1p_ref[...] = jnp.zeros(h1p_ref.shape, h1p_ref.dtype)
    h1p_ref[1:H + 1, 1:W + 1, :] = h1.reshape(H, W, c_mid)


def _conv2_3x3_from_padded(h1p_ref, w2_ref, H, W, c_mid, cdtype):
    """3x3 conv as 9 shifted MXU matmuls out of the padded (H+2,W+2,C) scratch.

    Taps are grouped by kx: one sublane-window gather per kx (3 total); the
    three ky shifts are then contiguous leading-dim slices of that gathered
    column block (cheap), instead of 9 full gathers.
    """
    acc = jnp.zeros((H * W, c_mid), jnp.float32)
    for kx in range(3):
        col = h1p_ref[:, kx:kx + W, :].reshape((H + 2) * W, c_mid).astype(cdtype)
        for ky in range(3):
            tap = col[ky * W: ky * W + H * W]                    # (H*W, c_mid)
            acc = acc + jnp.dot(tap, w2_ref[ky * 3 + kx],
                                preferred_element_type=jnp.float32)
    return acc


# ---------------------------------------------------------------------------
# Fully fused kernel (stride == 1): conv1+conv2+conv3+shortcut+relu, one image
# ---------------------------------------------------------------------------
def _fused_identity_kernel(x_ref, w1_ref, b1_ref, w2_ref, b2_ref, w3_ref,
                           b3_ref, o_ref, h1p_ref, *, H, W, c_mid, cdtype):
    x = x_ref[0]                                                  # (H*W, c_in)
    _conv1_to_padded(x, w1_ref, b1_ref, h1p_ref, H, W, c_mid)
    acc = _conv2_3x3_from_padded(h1p_ref, w2_ref, H, W, c_mid, cdtype)
    h2 = jnp.maximum(acc + b2_ref[...], 0.0).astype(cdtype)
    acc3 = jnp.dot(h2, w3_ref[...], preferred_element_type=jnp.float32)
    acc3 = acc3 + x.astype(jnp.float32) + b3_ref[...]             # identity add
    o_ref[0] = jnp.maximum(acc3, 0.0).astype(o_ref.dtype)


def _fused_proj_kernel(x_ref, w1_ref, b1_ref, w2_ref, b2_ref, w3_ref, ws_ref,
                       b3_ref, o_ref, h1p_ref, *, H, W, c_mid, cdtype):
    x = x_ref[0]                                                  # (H*W, c_in)
    _conv1_to_padded(x, w1_ref, b1_ref, h1p_ref, H, W, c_mid)
    acc = _conv2_3x3_from_padded(h1p_ref, w2_ref, H, W, c_mid, cdtype)
    h2 = jnp.maximum(acc + b2_ref[...], 0.0).astype(cdtype)
    acc3 = jnp.dot(h2, w3_ref[...], preferred_element_type=jnp.float32)
    acc3 = acc3 + jnp.dot(x, ws_ref[...],
                          preferred_element_type=jnp.float32)     # projection
    o_ref[0] = jnp.maximum(acc3 + b3_ref[...], 0.0).astype(o_ref.dtype)


def fused_block_stride1(x_nhwc, w1, b1, w2, b2, w3, ws, b3, *, compute_dtype):
    N, H, W, c_in = x_nhwc.shape
    c_mid = w1.shape[1]
    c_out = w3.shape[1]
    x2 = x_nhwc.reshape(N, H * W, c_in).astype(compute_dtype)
    w1 = w1.astype(compute_dtype)
    w2 = w2.astype(compute_dtype)                                 # (9,c_mid,c_mid)
    w3 = w3.astype(compute_dtype)
    b1 = b1.reshape(1, c_mid).astype(jnp.float32)
    b2 = b2.reshape(1, c_mid).astype(jnp.float32)
    b3 = b3.reshape(1, c_out).astype(jnp.float32)

    in_specs = [
        pl.BlockSpec((1, H * W, c_in), lambda n: (n, 0, 0)),
        pl.BlockSpec((c_in, c_mid), lambda n: (0, 0)),            # resident
        pl.BlockSpec((1, c_mid), lambda n: (0, 0)),
        pl.BlockSpec((9, c_mid, c_mid), lambda n: (0, 0, 0)),     # resident
        pl.BlockSpec((1, c_mid), lambda n: (0, 0)),
        pl.BlockSpec((c_mid, c_out), lambda n: (0, 0)),           # resident
    ]
    args = [x2, w1, b1, w2, b2, w3]
    flops = 2 * N * H * W * (c_in * c_mid + 9 * c_mid * c_mid + c_mid * c_out)
    if ws is not None:
        ws = ws.astype(compute_dtype)
        in_specs.append(pl.BlockSpec((c_in, c_out), lambda n: (0, 0)))
        args.append(ws)
        flops += 2 * N * H * W * c_in * c_out
        kernel = functools.partial(_fused_proj_kernel, H=H, W=W, c_mid=c_mid,
                                   cdtype=compute_dtype)
    else:
        kernel = functools.partial(_fused_identity_kernel, H=H, W=W,
                                   c_mid=c_mid, cdtype=compute_dtype)
    in_specs.append(pl.BlockSpec((1, c_out), lambda n: (0, 0)))
    args.append(b3)

    out = pl.pallas_call(
        kernel,
        out_shape=jax.ShapeDtypeStruct((N, H * W, c_out), jnp.float32),
        grid_spec=pltpu.PrefetchScalarGridSpec(
            num_scalar_prefetch=0,
            grid=(N,),
            in_specs=in_specs,
            out_specs=pl.BlockSpec((1, H * W, c_out), lambda n: (n, 0, 0)),
            scratch_shapes=[pltpu.VMEM((H + 2, W + 2, c_mid), jnp.float32)],
        ),
        compiler_params=_compiler_params(),
        cost_estimate=_cost(flops, args, N * H * W * c_out * 4),
    )(*args)
    return out.reshape(N, H, W, c_out)


# ---------------------------------------------------------------------------
# Kernel A (stride != 1 path): conv1(1x1)+bn1+relu + conv2(3x3 dense)+bn2+relu
# ---------------------------------------------------------------------------
def _conv1_conv2_kernel(x_ref, w1_ref, b1_ref, w2_ref, b2_ref, h2_ref, h1p_ref,
                        *, H, W, c_mid, cdtype):
    _conv1_to_padded(x_ref[0], w1_ref, b1_ref, h1p_ref, H, W, c_mid)
    acc = _conv2_3x3_from_padded(h1p_ref, w2_ref, H, W, c_mid, cdtype)
    h2 = jnp.maximum(acc + b2_ref[...], 0.0)
    h2_ref[0] = h2.astype(h2_ref.dtype)


def conv1_conv2(x_nhwc, w1, b1, w2, b2, *, compute_dtype):
    N, H, W, c_in = x_nhwc.shape
    c_mid = w1.shape[1]
    x2 = x_nhwc.reshape(N, H * W, c_in).astype(compute_dtype)
    w1 = w1.astype(compute_dtype)
    w2 = w2.astype(compute_dtype)                                 # (9,c_mid,c_mid)
    b1 = b1.reshape(1, c_mid).astype(jnp.float32)
    b2 = b2.reshape(1, c_mid).astype(jnp.float32)

    kernel = functools.partial(_conv1_conv2_kernel, H=H, W=W, c_mid=c_mid,
                               cdtype=compute_dtype)
    flops = 2 * N * H * W * c_mid * (c_in + 9 * c_mid)
    out_bytes = N * H * W * c_mid * jnp.dtype(compute_dtype).itemsize

    h2 = pl.pallas_call(
        kernel,
        out_shape=jax.ShapeDtypeStruct((N, H * W, c_mid), compute_dtype),
        grid_spec=pltpu.PrefetchScalarGridSpec(
            num_scalar_prefetch=0,
            grid=(N,),
            in_specs=[
                pl.BlockSpec((1, H * W, c_in), lambda n: (n, 0, 0)),
                pl.BlockSpec((c_in, c_mid), lambda n: (0, 0)),       # resident
                pl.BlockSpec((1, c_mid), lambda n: (0, 0)),
                pl.BlockSpec((9, c_mid, c_mid), lambda n: (0, 0, 0)),  # resident
                pl.BlockSpec((1, c_mid), lambda n: (0, 0)),
            ],
            out_specs=pl.BlockSpec((1, H * W, c_mid), lambda n: (n, 0, 0)),
            scratch_shapes=[pltpu.VMEM((H + 2, W + 2, c_mid), jnp.float32)],
        ),
        compiler_params=_compiler_params(),
        cost_estimate=_cost(flops, (x2, w1, b1, w2, b2), out_bytes),
    )(x2, w1, b1, w2, b2)
    return h2.reshape(N, H, W, c_mid)


# ---------------------------------------------------------------------------
# Kernel B (stride != 1 path): conv3(1x1)+bn3 + projection shortcut + add+relu
# ---------------------------------------------------------------------------
def _conv3_proj_kernel(h2_ref, xs_ref, w3_ref, ws_ref, b_ref, o_ref):
    acc = jnp.dot(h2_ref[...], w3_ref[...], preferred_element_type=jnp.float32)
    acc = acc + jnp.dot(xs_ref[...], ws_ref[...],
                        preferred_element_type=jnp.float32)
    o_ref[...] = jnp.maximum(acc + b_ref[...], 0.0).astype(o_ref.dtype)


def conv3_add_relu_proj(h2, xs, w3, ws, bias, *, compute_dtype):
    """relu(h2 @ w3 + xs @ ws + bias), tiled over rows M."""
    M, c_mid = h2.shape
    c_out = w3.shape[1]
    c_sc = xs.shape[1]
    itm = jnp.dtype(compute_dtype).itemsize
    tm = _choose_m_tile(M, (c_mid + c_sc) * itm + c_out * 4)
    grid = (pl.cdiv(M, tm),)

    h2 = h2.astype(compute_dtype)
    xs = xs.astype(compute_dtype)
    w3 = w3.astype(compute_dtype)
    ws = ws.astype(compute_dtype)
    bias = bias.reshape(1, c_out).astype(jnp.float32)
    flops = 2 * M * (c_mid + c_sc) * c_out

    return pl.pallas_call(
        _conv3_proj_kernel,
        out_shape=jax.ShapeDtypeStruct((M, c_out), jnp.float32),
        grid_spec=pltpu.PrefetchScalarGridSpec(
            num_scalar_prefetch=0,
            grid=grid,
            in_specs=[
                pl.BlockSpec((tm, c_mid), lambda i: (i, 0)),
                pl.BlockSpec((tm, c_sc), lambda i: (i, 0)),
                pl.BlockSpec((c_mid, c_out), lambda i: (0, 0)),    # resident
                pl.BlockSpec((c_sc, c_out), lambda i: (0, 0)),     # resident
                pl.BlockSpec((1, c_out), lambda i: (0, 0)),
            ],
            out_specs=pl.BlockSpec((tm, c_out), lambda i: (i, 0)),
        ),
        compiler_params=_compiler_params(),
        cost_estimate=_cost(flops, (h2, xs, w3, ws, bias), M * c_out * 4),
    )(h2, xs, w3, ws, bias)


# ---------------------------------------------------------------------------
# Parameter construction, BN folding, forward wrapper
# ---------------------------------------------------------------------------
def _bn_fold(gamma, beta, mean, var, eps=1e-5):
    scale = gamma / jnp.sqrt(var + eps)
    return scale, beta - mean * scale


def init_params(key, input_channel, output_channel, stride, expansion=4):
    c_in, c_mid = input_channel, output_channel
    c_out = output_channel * expansion
    ks = jax.random.split(key, 16)

    def bn_params(k, c):
        k1, k2, k3, k4 = jax.random.split(k, 4)
        gamma = 1.0 + 0.1 * jax.random.normal(k1, (c,), jnp.float32)
        beta = 0.1 * jax.random.normal(k2, (c,), jnp.float32)
        mean = 0.1 * jax.random.normal(k3, (c,), jnp.float32)
        var = 0.5 + 0.5 * jnp.abs(jax.random.normal(k4, (c,), jnp.float32))
        return gamma, beta, mean, var

    p = {
        "w1": 0.2 * jax.random.normal(ks[0], (c_in, c_mid), jnp.float32),         # 1x1
        "w2": 0.2 * jax.random.normal(ks[1], (3, 3, c_mid, c_mid), jnp.float32),  # 3x3 HWIO
        "w3": 0.2 * jax.random.normal(ks[2], (c_mid, c_out), jnp.float32),        # 1x1
        "bn1": bn_params(ks[3], c_mid),
        "bn2": bn_params(ks[4], c_mid),
        "bn3": bn_params(ks[5], c_out),
    }
    p["has_proj"] = (stride != 1) or (c_in != c_out)
    if p["has_proj"]:
        p["ws"] = 0.2 * jax.random.normal(ks[6], (c_in, c_out), jnp.float32)      # 1x1
        p["bns"] = bn_params(ks[7], c_out)
    return p


def residual_block2_forward(x_nchw, params, stride, *,
                            compute_dtype=jnp.bfloat16):
    """Pallas implementation of Residual_Block2.forward. Input/output: NCHW."""
    x = jnp.transpose(x_nchw, (0, 2, 3, 1)).astype(jnp.float32)   # -> NHWC
    N, H, W, c_in = x.shape
    c_mid = params["w1"].shape[1]
    c_out = params["w3"].shape[1]

    # One-time fold of BN scales into the conv weights (outside the hot path).
    s1, b1 = _bn_fold(*params["bn1"])
    s2, b2 = _bn_fold(*params["bn2"])
    s3, b3 = _bn_fold(*params["bn3"])
    w1f = params["w1"] * s1[None, :]
    w2f = (params["w2"] * s2[None, None, None, :]).reshape(9, c_mid, c_mid)
    w3f = params["w3"] * s3[None, :]

    if params["has_proj"]:
        ss, bs = _bn_fold(*params["bns"])
        wsf = params["ws"] * ss[None, :]
    else:
        wsf, bs = None, None

    x_cd = x.astype(compute_dtype)

    if stride == 1:
        # Fully fused single kernel: no HBM round trip for the mid activation,
        # x read once (also serves as the residual).
        bias3 = b3 + bs if params["has_proj"] else b3
        out = fused_block_stride1(x_cd, w1f, b1, w2f, b2, w3f, wsf, bias3,
                                  compute_dtype=compute_dtype)
    else:
        # stride != 1  =>  projection shortcut (by module definition).
        h2d = conv1_conv2(x_cd, w1f, b1, w2f, b2, compute_dtype=compute_dtype)
        # Apply the conv2 stride as a cheap strided slice (keeps all in-kernel
        # accesses unit-stride).  Dense(h, w)[::s, ::s] == strided conv output.
        h2s = h2d[:, ::stride, ::stride, :]
        Ho, Wo = h2s.shape[1], h2s.shape[2]
        M = N * Ho * Wo
        xs = x_cd[:, ::stride, ::stride, :].reshape(M, c_in)
        out = conv3_add_relu_proj(h2s.reshape(M, c_mid), xs, w3f, wsf, b3 + bs,
                                  compute_dtype=compute_dtype)
        out = out.reshape(N, Ho, Wo, c_out)

    return jnp.transpose(out, (0, 3, 1, 2))  # -> NCHW


# ---------------------------------------------------------------------------
# Pure-JAX reference (lax.conv) for correctness checking
# ---------------------------------------------------------------------------
def _reference_forward(x_nchw, params, stride):
    def conv(x, w_oihw, s, pad):
        return jax.lax.conv_general_dilated(
            x, w_oihw, (s, s), [(pad, pad), (pad, pad)],
            dimension_numbers=("NCHW", "OIHW", "NCHW"))

    def bn(x, bn_p):
        gamma, beta, mean, var = bn_p
        r = lambda v: v.reshape(1, -1, 1, 1)
        return (x - r(mean)) / jnp.sqrt(r(var) + 1e-5) * r(gamma) + r(beta)

    w1 = jnp.transpose(params["w1"], (1, 0))[:, :, None, None]
    w2 = jnp.transpose(params["w2"], (3, 2, 0, 1))
    w3 = jnp.transpose(params["w3"], (1, 0))[:, :, None, None]

    out = jax.nn.relu(bn(conv(x_nchw, w1, 1, 0), params["bn1"]))
    out = jax.nn.relu(bn(conv(out, w2, stride, 1), params["bn2"]))
    out = bn(conv(out, w3, 1, 0), params["bn3"])
    if params["has_proj"]:
        ws = jnp.transpose(params["ws"], (1, 0))[:, :, None, None]
        short = bn(conv(x_nchw, ws, stride, 0), params["bns"])
    else:
        short = x_nchw
    return jax.nn.relu(out + short)


# ---------------------------------------------------------------------------
if __name__ == "__main__":
    key = jax.random.PRNGKey(0)

    configs = [
        (4, 4, 2),    # stride-2 projection  -> two-kernel path    (out: 2,16,8,8)
        (16, 4, 1),   # stride-1 identity    -> fused kernel       (out: 2,16,16,16)
        (4, 4, 1),    # stride-1 projection  -> fused kernel + ws  (out: 2,16,16,16)
    ]
    for idx, (cin, cout, stride) in enumerate(configs):
        k_x, k_p = jax.random.split(jax.random.fold_in(key, idx))
        x = jax.random.normal(k_x, (2, cin, 16, 16), jnp.float32)   # NCHW
        params = init_params(k_p, cin, cout, stride)

        ref = jax.block_until_ready(_reference_forward(x, params, stride))

        # f32 compute path -- tight check of the kernel structure.
        out32 = jax.block_until_ready(
            residual_block2_forward(x, params, stride,
                                    compute_dtype=jnp.float32))
        assert out32.shape == ref.shape, (out32.shape, ref.shape)
        assert jnp.allclose(out32, ref, rtol=1e-3, atol=1e-3), (
            float(jnp.max(jnp.abs(out32 - ref))))

        # bf16 matmul operands (f32 accumulation) -- production config; loose
        # tolerance accounts only for bf16 rounding of activations/weights.
        out16 = jax.block_until_ready(
            residual_block2_forward(x, params, stride,
                                    compute_dtype=jnp.bfloat16))
        assert out16.shape == ref.shape, (out16.shape, ref.shape)
        assert jnp.allclose(out16, ref, rtol=1e-1, atol=1e-1), (
            float(jnp.max(jnp.abs(out16 - ref))))

    print("KERNEL_OK")
</pallas_src>

<mosaic_0001>
module attributes {stable_mosaic.version = 11 : i64} {
  func.func @_conv1_conv2_kernel(%arg0: i32, %arg1: memref<1x256x4xf32, #tpu.memory_space<vmem>>, %arg2: memref<4x4xf32, #tpu.memory_space<vmem>>, %arg3: memref<1x4xf32, #tpu.memory_space<vmem>>, %arg4: memref<9x4x4xf32, #tpu.memory_space<vmem>>, %arg5: memref<1x4xf32, #tpu.memory_space<vmem>>, %arg6: memref<1x256x4xf32, #tpu.memory_space<vmem>>, %arg7: memref<18x18x4xf32, #tpu.memory_space<vmem>>) attributes {dimension_semantics = [#tpu.dimension_semantics<parallel>], iteration_bounds = array<i64: 2>, scalar_prefetch = 0 : i64, scratch_operands = 1 : i64, tpu.core_type = #tpu.core_type<tc>, window_params = [{transform_indices = @transform_0, window_bounds = array<i64: 1, 256, 4>}, {pipeline_mode = #tpu.pipeline_mode<synchronous>, transform_indices = @transform_1, window_bounds = array<i64: 4, 4>}, {pipeline_mode = #tpu.pipeline_mode<synchronous>, transform_indices = @transform_2, window_bounds = array<i64: 1, 4>}, {pipeline_mode = #tpu.pipeline_mode<synchronous>, transform_indices = @transform_3, window_bounds = array<i64: 9, 4, 4>}, {pipeline_mode = #tpu.pipeline_mode<synchronous>, transform_indices = @transform_4, window_bounds = array<i64: 1, 4>}, {transform_indices = @transform_5, window_bounds = array<i64: 1, 256, 4>}]} {
    %c0 = arith.constant 0 : index
    %c0_0 = arith.constant 0 : index
    %c0_1 = arith.constant 0 : index
    %0 = vector.load %arg1[%c0, %c0_0, %c0_1] : memref<1x256x4xf32, #tpu.memory_space<vmem>>, vector<1x256x4xf32>
    %1 = vector.shape_cast %0 : vector<1x256x4xf32> to vector<256x4xf32>
    %c0_2 = arith.constant 0 : index
    %c0_3 = arith.constant 0 : index
    %2 = vector.load %arg2[%c0_2, %c0_3] : memref<4x4xf32, #tpu.memory_space<vmem>>, vector<4x4xf32>
    %cst = arith.constant dense<0.000000e+00> : vector<256x4xf32>
    %3 = tpu.matmul %1, %2, %cst {dimension_numbers = #tpu.dot_dimension_numbers<[1], [0], [0], [1], [0, 0, 1, 1], [], []>} : vector<256x4xf32>, vector<4x4xf32>, vector<256x4xf32> -> vector<256x4xf32>
    %c0_4 = arith.constant 0 : index
    %c0_5 = arith.constant 0 : index
    %4 = vector.load %arg3[%c0_4, %c0_5] : memref<1x4xf32, #tpu.memory_space<vmem>>, vector<1x4xf32>
    %5 = vector.broadcast %4 : vector<1x4xf32> to vector<256x4xf32>
    %6 = arith.addf %3, %5 : vector<256x4xf32>
    %cst_6 = arith.constant 0.000000e+00 : f32
    %7 = vector.broadcast %cst_6 : f32 to vector<256x4xf32>
    %8 = arith.maximumf %6, %7 : vector<256x4xf32>
    %cst_7 = arith.constant 0.000000e+00 : f32
    %9 = vector.broadcast %cst_7 : f32 to vector<18x18x4xf32>
    %c0_8 = arith.constant 0 : index
    %c0_9 = arith.constant 0 : index
    %c0_10 = arith.constant 0 : index
    %10 = vector.load %arg7[%c0_8, %c0_9, %c0_10] : memref<18x18x4xf32, #tpu.memory_space<vmem>>, vector<18x18x4xf32>
    tpu.vector_store %arg7[%c0_8, %c0_9, %c0_10], %9 {strides = array<i32>} : memref<18x18x4xf32, #tpu.memory_space<vmem>>, vector<18x18x4xf32>,
    %11 = vector.shape_cast %8 : vector<256x4xf32> to vector<16x16x4xf32>
    %c1 = arith.constant 1 : index
    %c1_11 = arith.constant 1 : index
    %c0_12 = arith.constant 0 : index
    %12 = vector.load %arg7[%c1, %c1_11, %c0_12] : memref<18x18x4xf32, #tpu.memory_space<vmem>>, vector<16x16x4xf32>
    tpu.vector_store %arg7[%c1, %c1_11, %c0_12], %11 {strides = array<i32>} : memref<18x18x4xf32, #tpu.memory_space<vmem>>, vector<16x16x4xf32>,
    %cst_13 = arith.constant 0.000000e+00 : f32
    %13 = vector.broadcast %cst_13 : f32 to vector<256x4xf32>
    %c0_14 = arith.constant 0 : index
    %c0_15 = arith.constant 0 : index
    %c0_16 = arith.constant 0 : index
    %14 = vector.load %arg7[%c0_14, %c0_15, %c0_16] : memref<18x18x4xf32, #tpu.memory_space<vmem>>, vector<18x16x4xf32>
    %15 = vector.shape_cast %14 : vector<18x16x4xf32> to vector<288x4xf32>
    %16 = vector.extract_strided_slice %15 {offsets = [0, 0], sizes = [256, 4], strides = [1, 1]} : vector<288x4xf32> to vector<256x4xf32>
    %c0_17 = arith.constant 0 : index
    %c0_18 = arith.constant 0 : index
    %c0_19 = arith.constant 0 : index
    %17 = vector.load %arg4[%c0_17, %c0_18, %c0_19] : memref<9x4x4xf32, #tpu.memory_space<vmem>>, vector<1x4x4xf32>
    %18 = vector.shape_cast %17 : vector<1x4x4xf32> to vector<4x4xf32>
    %cst_20 = arith.constant dense<0.000000e+00> : vector<256x4xf32>
    %19 = tpu.matmul %16, %18, %cst_20 {dimension_numbers = #tpu.dot_dimension_numbers<[1], [0], [0], [1], [0, 0, 1, 1], [], []>} : vector<256x4xf32>, vector<4x4xf32>, vector<256x4xf32> -> vector<256x4xf32>
    %20 = arith.addf %13, %19 : vector<256x4xf32>
    %21 = vector.extract_strided_slice %15 {offsets = [16, 0], sizes = [256, 4], strides = [1, 1]} : vector<288x4xf32> to vector<256x4xf32>
    %c3 = arith.constant 3 : index
    %c0_21 = arith.constant 0 : index
    %c0_22 = arith.constant 0 : index
    %22 = vector.load %arg4[%c3, %c0_21, %c0_22] : memref<9x4x4xf32, #tpu.memory_space<vmem>>, vector<1x4x4xf32>
    %23 = vector.shape_cast %22 : vector<1x4x4xf32> to vector<4x4xf32>
    %cst_23 = arith.constant dense<0.000000e+00> : vector<256x4xf32>
    %24 = tpu.matmul %21, %23, %cst_23 {dimension_numbers = #tpu.dot_dimension_numbers<[1], [0], [0], [1], [0, 0, 1, 1], [], []>} : vector<256x4xf32>, vector<4x4xf32>, vector<256x4xf32> -> vector<256x4xf32>
    %25 = arith.addf %20, %24 : vector<256x4xf32>
    %26 = vector.extract_strided_slice %15 {offsets = [32, 0], sizes = [256, 4], strides = [1, 1]} : vector<288x4xf32> to vector<256x4xf32>
    %c6 = arith.constant 6 : index
    %c0_24 = arith.constant 0 : index
    %c0_25 = arith.constant 0 : index
    %27 = vector.load %arg4[%c6, %c0_24, %c0_25] : memref<9x4x4xf32, #tpu.memory_space<vmem>>, vector<1x4x4xf32>
    %28 = vector.shape_cast %27 : vector<1x4x4xf32> to vector<4x4xf32>
    %cst_26 = arith.constant dense<0.000000e+00> : vector<256x4xf32>
    %29 = tpu.matmul %26, %28, %cst_26 {dimension_numbers = #tpu.dot_dimension_numbers<[1], [0], [0], [1], [0, 0, 1, 1], [], []>} : vector<256x4xf32>, vector<4x4xf32>, vector<256x4xf32> -> vector<256x4xf32>
    %30 = arith.addf %25, %29 : vector<256x4xf32>
    %c0_27 = arith.constant 0 : index
    %c1_28 = arith.constant 1 : index
    %c0_29 = arith.constant 0 : index
    %31 = vector.load %arg7[%c0_27, %c1_28, %c0_29] : memref<18x18x4xf32, #tpu.memory_space<vmem>>, vector<18x16x4xf32>
    %32 = vector.shape_cast %31 : vector<18x16x4xf32> to vector<288x4xf32>
    %33 = vector.extract_strided_slice %32 {offsets = [0, 0], sizes = [256, 4], strides = [1, 1]} : vector<288x4xf32> to vector<256x4xf32>
    %c1_30 = arith.constant 1 : index
    %c0_31 = arith.constant 0 : index
    %c0_32 = arith.constant 0 : index
    %34 = vector.load %arg4[%c1_30, %c0_31, %c0_32] : memref<9x4x4xf32, #tpu.memory_space<vmem>>, vector<1x4x4xf32>
    %35 = vector.shape_cast %34 : vector<1x4x4xf32> to vector<4x4xf32>
    %cst_33 = arith.constant dense<0.000000e+00> : vector<256x4xf32>
    %36 = tpu.matmul %33, %35, %cst_33 {dimension_numbers = #tpu.dot_dimension_numbers<[1], [0], [0], [1], [0, 0, 1, 1], [], []>} : vector<256x4xf32>, vector<4x4xf32>, vector<256x4xf32> -> vector<256x4xf32>
    %37 = arith.addf %30, %36 : vector<256x4xf32>
    %38 = vector.extract_strided_slice %32 {offsets = [16, 0], sizes = [256, 4], strides = [1, 1]} : vector<288x4xf32> to vector<256x4xf32>
    %c4 = arith.constant 4 : index
    %c0_34 = arith.constant 0 : index
    %c0_35 = arith.constant 0 : index
    %39 = vector.load %arg4[%c4, %c0_34, %c0_35] : memref<9x4x4xf32, #tpu.memory_space<vmem>>, vector<1x4x4xf32>
    %40 = vector.shape_cast %39 : vector<1x4x4xf32> to vector<4x4xf32>
    %cst_36 = arith.constant dense<0.000000e+00> : vector<256x4xf32>
    %41 = tpu.matmul %38, %40, %cst_36 {dimension_numbers = #tpu.dot_dimension_numbers<[1], [0], [0], [1], [0, 0, 1, 1], [], []>} : vector<256x4xf32>, vector<4x4xf32>, vector<256x4xf32> -> vector<256x4xf32>
    %42 = arith.addf %37, %41 : vector<256x4xf32>
    %43 = vector.extract_strided_slice %32 {offsets = [32, 0], sizes = [256, 4], strides = [1, 1]} : vector<288x4xf32> to vector<256x4xf32>
    %c7 = arith.constant 7 : index
    %c0_37 = arith.constant 0 : index
    %c0_38 = arith.constant 0 : index
    %44 = vector.load %arg4[%c7, %c0_37, %c0_38] : memref<9x4x4xf32, #tpu.memory_space<vmem>>, vector<1x4x4xf32>
    %45 = vector.shape_cast %44 : vector<1x4x4xf32> to vector<4x4xf32>
    %cst_39 = arith.constant dense<0.000000e+00> : vector<256x4xf32>
    %46 = tpu.matmul %43, %45, %cst_39 {dimension_numbers = #tpu.dot_dimension_numbers<[1], [0], [0], [1], [0, 0, 1, 1], [], []>} : vector<256x4xf32>, vector<4x4xf32>, vector<256x4xf32> -> vector<256x4xf32>
    %47 = arith.addf %42, %46 : vector<256x4xf32>
    %c0_40 = arith.constant 0 : index
    %c2 = arith.constant 2 : index
    %c0_41 = arith.constant 0 : index
    %48 = vector.load %arg7[%c0_40, %c2, %c0_41] : memref<18x18x4xf32, #tpu.memory_space<vmem>>, vector<18x16x4xf32>
    %49 = vector.shape_cast %48 : vector<18x16x4xf32> to vector<288x4xf32>
    %50 = vector.extract_strided_slice %49 {offsets = [0, 0], sizes = [256, 4], strides = [1, 1]} : vector<288x4xf32> to vector<256x4xf32>
    %c2_42 = arith.constant 2 : index
    %c0_43 = arith.constant 0 : index
    %c0_44 = arith.constant 0 : index
    %51 = vector.load %arg4[%c2_42, %c0_43, %c0_44] : memref<9x4x4xf32, #tpu.memory_space<vmem>>, vector<1x4x4xf32>
    %52 = vector.shape_cast %51 : vector<1x4x4xf32> to vector<4x4xf32>
    %cst_45 = arith.constant dense<0.000000e+00> : vector<256x4xf32>
    %53 = tpu.matmul %50, %52, %cst_45 {dimension_numbers = #tpu.dot_dimension_numbers<[1], [0], [0], [1], [0, 0, 1, 1], [], []>} : vector<256x4xf32>, vector<4x4xf32>, vector<256x4xf32> -> vector<256x4xf32>
    %54 = arith.addf %47, %53 : vector<256x4xf32>
    %55 = vector.extract_strided_slice %49 {offsets = [16, 0], sizes = [256, 4], strides = [1, 1]} : vector<288x4xf32> to vector<256x4xf32>
    %c5 = arith.constant 5 : index
    %c0_46 = arith.constant 0 : index
    %c0_47 = arith.constant 0 : index
    %56 = vector.load %arg4[%c5, %c0_46, %c0_47] : memref<9x4x4xf32, #tpu.memory_space<vmem>>, vector<1x4x4xf32>
    %57 = vector.shape_cast %56 : vector<1x4x4xf32> to vector<4x4xf32>
    %cst_48 = arith.constant dense<0.000000e+00> : vector<256x4xf32>
    %58 = tpu.matmul %55, %57, %cst_48 {dimension_numbers = #tpu.dot_dimension_numbers<[1], [0], [0], [1], [0, 0, 1, 1], [], []>} : vector<256x4xf32>, vector<4x4xf32>, vector<256x4xf32> -> vector<256x4xf32>
    %59 = arith.addf %54, %58 : vector<256x4xf32>
    %60 = vector.extract_strided_slice %49 {offsets = [32, 0], sizes = [256, 4], strides = [1, 1]} : vector<288x4xf32> to vector<256x4xf32>
    %c8 = arith.constant 8 : index
    %c0_49 = arith.constant 0 : index
    %c0_50 = arith.constant 0 : index
    %61 = vector.load %arg4[%c8, %c0_49, %c0_50] : memref<9x4x4xf32, #tpu.memory_space<vmem>>, vector<1x4x4xf32>
    %62 = vector.shape_cast %61 : vector<1x4x4xf32> to vector<4x4xf32>
    %cst_51 = arith.constant dense<0.000000e+00> : vector<256x4xf32>
    %63 = tpu.matmul %60, %62, %cst_51 {dimension_numbers = #tpu.dot_dimension_numbers<[1], [0], [0], [1], [0, 0, 1, 1], [], []>} : vector<256x4xf32>, vector<4x4xf32>, vector<256x4xf32> -> vector<256x4xf32>
    %64 = arith.addf %59, %63 : vector<256x4xf32>
    %c0_52 = arith.constant 0 : index
    %c0_53 = arith.constant 0 : index
    %65 = vector.load %arg5[%c0_52, %c0_53] : memref<1x4xf32, #tpu.memory_space<vmem>>, vector<1x4xf32>
    %66 = vector.broadcast %65 : vector<1x4xf32> to vector<256x4xf32>
    %67 = arith.addf %64, %66 : vector<256x4xf32>
    %cst_54 = arith.constant 0.000000e+00 : f32
    %68 = vector.broadcast %cst_54 : f32 to vector<256x4xf32>
    %69 = arith.maximumf %67, %68 : vector<256x4xf32>
    %c0_55 = arith.constant 0 : index
    %c0_56 = arith.constant 0 : index
    %c0_57 = arith.constant 0 : index
    %70 = vector.load %arg6[%c0_55, %c0_56, %c0_57] : memref<1x256x4xf32, #tpu.memory_space<vmem>>, vector<1x256x4xf32>
    %71 = vector.shape_cast %70 : vector<1x256x4xf32> to vector<256x4xf32>
    %72 = vector.shape_cast %69 : vector<256x4xf32> to vector<1x256x4xf32>
    tpu.vector_store %arg6[%c0_55, %c0_56, %c0_57], %72 {strides = array<i32>} : memref<1x256x4xf32, #tpu.memory_space<vmem>>, vector<1x256x4xf32>,
    return
  }
  func.func @transform_0(%arg0: i32) -> (i32, i32, i32) {
    %c0_i32 = arith.constant 0 : i32
    %c0_i32_0 = arith.constant 0 : i32
    %c0_i32_1 = arith.constant 0 : i32
    return %arg0, %c0_i32, %c0_i32_0 : i32, i32, i32
  }
  func.func @transform_1(%arg0: i32) -> (i32, i32) {
    %c0_i32 = arith.constant 0 : i32
    %c0_i32_0 = arith.constant 0 : i32
    %c0_i32_1 = arith.constant 0 : i32
    return %c0_i32, %c0_i32_0 : i32, i32
  }
  func.func @transform_2(%arg0: i32) -> (i32, i32) {
    %c0_i32 = arith.constant 0 : i32
    %c0_i32_0 = arith.constant 0 : i32
    %c0_i32_1 = arith.constant 0 : i32
    return %c0_i32, %c0_i32_0 : i32, i32
  }
  func.func @transform_3(%arg0: i32) -> (i32, i32, i32) {
    %c0_i32 = arith.constant 0 : i32
    %c0_i32_0 = arith.constant 0 : i32
    %c0_i32_1 = arith.constant 0 : i32
    %c0_i32_2 = arith.constant 0 : i32
    return %c0_i32, %c0_i32_0, %c0_i32_1 : i32, i32, i32
  }
  func.func @transform_4(%arg0: i32) -> (i32, i32) {
    %c0_i32 = arith.constant 0 : i32
    %c0_i32_0 = arith.constant 0 : i32
    %c0_i32_1 = arith.constant 0 : i32
    return %c0_i32, %c0_i32_0 : i32, i32
  }
  func.func @transform_5(%arg0: i32) -> (i32, i32, i32) {
    %c0_i32 = arith.constant 0 : i32
    %c0_i32_0 = arith.constant 0 : i32
    %c0_i32_1 = arith.constant 0 : i32
    return %arg0, %c0_i32, %c0_i32_0 : i32, i32, i32
  }
}

</mosaic_0001>

<bundles_post_ra>
// kernel: tpu_custom_call.1
= control target key start
LH: loop header
LB: loop body
LE: loop exit
PB: predicated region body
PF: predicated region fallthrough
CT: control target
= control target key end

     0   :  { %s2871_s18 = smov 0   ;;  %s4493_s0 = inlined_call_operand.vmem [shape: f32[2,256,4], index: 0, kind: input, shape index: {}]   ;;  %s4494_s1 = inlined_call_operand.vmem [shape: f32[4,4], index: 1, kind: input, shape index: {}]   ;;  %s4495_s2 = inlined_call_operand.vmem [shape: f32[1,4], index: 2, kind: input, shape index: {}]   ;;  %s4496_s3 = inlined_call_operand.vmem [shape: f32[9,4,4], index: 3, kind: input, shape index: {}]   ;;  %s4497_s4 = inlined_call_operand.vmem [shape: f32[1,4], index: 4, kind: input, shape index: {}]   ;;  %s4498_s5 = inlined_call_operand.vmem [shape: f32[2,256,4], index: 5, kind: output, shape index: {}]  }
   0x1 LB: > { %s2468_s19 = sadd.s32 4294967295, %s2838_s18   ;;  %p2472_p0 = scmp.ge.s32.totalorder %s2838_s18, 1  ;;  %s2838_s18 = sphi %s2871_s18, %s15_s18  }
   0x2   : > { %p187_p1 = scmp.lt.s32.totalorder %s2838_s18, 3 }
   0x4   : > { %p188_p2 = pnand %p2472_p0, %p187_p1 }
   0x6   : > { %191 = sbr.rel (%p188_p2) target bundleno = 938 (0x3aa), region = 40 }
   0xb   : > { %v257_v0 = vld [vmem:[%s4494_s1] sm:$0xf]  ;;  %vm359_vm0 = vcmask 1043456   ;;  %p215_p3 = scmp.lt.s32.totalorder %s2468_s19, 1  ;;  %vm262_vm1 = vcmask 31744   ;;  %v2840_v25 = vmov 0.0  }
   0xc   : > { %2477 = vmatpush.msk.msra.mxu0 %vm359_vm0, %v257_v0  ;;  %2819 = vmatpush.msk.msra.mxu2 %vm359_vm0, %v257_v0  ;;  %512 = vst.msk [vmem:[#allocation2 + $0x18] sm:$0xff] %vm262_vm1, %v2840_v25  ;;  %v632_v28 = vld [vmem:[%s4496_s3] sm:$0xf]  ;;  %v2611_v29 = vld [vmem:[%s4496_s3 + $0x4] sm:$0xf]  ;;  %vm510_vm2 = vcmask 25600  }
   0xd   : > { %s4666_s19 = smov (!%p215_p3, %s2468_s19), 1  ;;  %513 = vst.msk [vmem:[#allocation2 + $0x20] sm:$0xff] %vm262_vm1, %v2840_v25  ;;  %v2510_v32 = vld [vmem:[%s4496_s3 + $0xc] sm:$0xf]  ;;  %v2577_v35 = vld [vmem:[%s4496_s3 + $0x18] sm:$0xf] }
   0xe   : > { %s2817_s22 = sshll.u32 %s4666_s19, 8  ;;  %508 = vst.msk [vmem:[#allocation2] sm:$0xff] %vm262_vm1, %v2840_v25  ;;  %2544 = vmatpush.msk.msrb.mxu2 %vm359_vm0, %v632_v28  ;;  %2612 = vmatpush.msk.msrb.mxu0 %vm359_vm0, %v2611_v29  ;;  %v3046_v38 = vld [vmem:[%s4495_s2] ss:$0 sm:$0xff]  ;;  %v2645_v39 = vld [vmem:[%s4496_s3 + $0x10] sm:$0xf] }
   0xf   : > { %s2892_s25 = scalar_lea.vmem %s4493_s0, %s2817_s22  ;;  %509 = vst.msk [vmem:[#allocation2 + $0x8] sm:$0xff] %vm262_vm1, %v2840_v25  ;;  %2511 = vmatpush.msk.msra.mxu1 %vm359_vm0, %v2510_v32  ;;  %2820 = vmatpush.msk.msra.mxu3 %vm359_vm0, %v2510_v32  ;;  %s4273_s28 = scalar_lea.vmem %s4498_s5, %s2817_s22 }
  0x10   : > { %v225_v1 = vld [vmem:[%s2892_s25] sm:$0xff]  ;;  %v226_v3 = vld [vmem:[%s2892_s25 + $0x8] sm:$0xff]  ;;  %v227_v5 = vld [vmem:[%s2892_s25 + $0x10] sm:$0xff]  ;;  %515 = vst.msk [vmem:[#allocation2 + $0x30] sm:$0xff] %vm262_vm1, %v2840_v25 }
  0x11   : > { %v241_v2 = vld [vmem:[%s2892_s25 + $0x80] sm:$0xff]  ;;  %2478 = vmatmul.msk.f32.vlgmr.msra.gmra.mxu0 %vm262_vm1, %v225_v1  ;;  %v242_v4 = vld [vmem:[%s2892_s25 + $0x88] sm:$0xff]  ;;  %v243_v6 = vld [vmem:[%s2892_s25 + $0x90] sm:$0xff]  ;;  %516 = vst.msk [vmem:[#allocation2 + $0x38] sm:$0xff] %vm262_vm1, %v2840_v25  ;;  %2578 = vmatpush.msk.msrb.mxu3 %vm359_vm0, %v2577_v35 }
  0x12   : > { %2494 = vmatmul.msk.f32.vlgmr.msra.gmra.mxu2 %vm262_vm1, %v241_v2  ;;  %v228_v7 = vld [vmem:[%s2892_s25 + $0x18] sm:$0xff]  ;;  %v229_v9 = vld [vmem:[%s2892_s25 + $0x20] sm:$0xff]  ;;  %v230_v11 = vld [vmem:[%s2892_s25 + $0x28] sm:$0xff]  ;;  %518 = vst.msk [vmem:[#allocation2 + $0x48] sm:$0xff] %vm262_vm1, %v2840_v25  ;;  %2646 = vmatpush.msk.msrb.mxu1 %vm359_vm0, %v2645_v39 }
  0x13   : > { %v244_v8 = vld [vmem:[%s2892_s25 + $0x98] sm:$0xff]  ;;  %v245_v10 = vld [vmem:[%s2892_s25 + $0xa0] sm:$0xff]  ;;  %v246_v12 = vld [vmem:[%s2892_s25 + $0xa8] sm:$0xff]  ;;  %519 = vst.msk [vmem:[#allocation2 + $0x50] sm:$0xff] %vm262_vm1, %v2840_v25 }
  0x14   : > { %v231_v13 = vld [vmem:[%s2892_s25 + $0x30] sm:$0xff]  ;;  %v232_v15 = vld [vmem:[%s2892_s25 + $0x38] sm:$0xff]  ;;  %v233_v17 = vld [vmem:[%s2892_s25 + $0x40] sm:$0xff]  ;;  %521 = vst.msk [vmem:[#allocation2 + $0x60] sm:$0xff] %vm262_vm1, %v2840_v25 }
  0x15   : > { %v247_v14 = vld [vmem:[%s2892_s25 + $0xb0] sm:$0xff]  ;;  %v248_v16 = vld [vmem:[%s2892_s25 + $0xb8] sm:$0xff]  ;;  %v249_v18 = vld [vmem:[%s2892_s25 + $0xc0] sm:$0xff]  ;;  %522 = vst.msk [vmem:[#allocation2 + $0x68] sm:$0xff] %vm262_vm1, %v2840_v25 }
  0x16   : > { %v234_v19 = vld [vmem:[%s2892_s25 + $0x48] sm:$0xff]  ;;  %v235_v21 = vld [vmem:[%s2892_s25 + $0x50] sm:$0xff]  ;;  %v236_v23 = vld [vmem:[%s2892_s25 + $0x58] sm:$0xff]  ;;  %524 = vst.msk [vmem:[#allocation2 + $0x78] sm:$0xff] %vm262_vm1, %v2840_v25 }
  0x17   : > { %v250_v20 = vld [vmem:[%s2892_s25 + $0xc8] sm:$0xff]  ;;  %v251_v22 = vld [vmem:[%s2892_s25 + $0xd0] sm:$0xff]  ;;  %v252_v24 = vld [vmem:[%s2892_s25 + $0xd8] sm:$0xff]  ;;  %525 = vst.msk [vmem:[#allocation2 + $0x80] sm:$0xff] %vm262_vm1, %v2840_v25 }
  0x18   : > { %v237_v26 = vld [vmem:[%s2892_s25 + $0x60] sm:$0xff]  ;;  %527 = vst.msk [vmem:[#allocation2 + $0x90] sm:$0xff] %vm262_vm1, %v2840_v25  ;;  %v238_v30 = vld [vmem:[%s2892_s25 + $0x68] sm:$0xff]  ;;  %v239_v33 = vld [vmem:[%s2892_s25 + $0x70] sm:$0xff] }
  0x19   : > { %2479 = vmatmul.msk.f32.gmra.mxu0 %vm262_vm1, %v226_v3  ;;  %v253_v27 = vld [vmem:[%s2892_s25 + $0xe0] sm:$0xff]  ;;  %v254_v31 = vld [vmem:[%s2892_s25 + $0xe8] sm:$0xff]  ;;  %528 = vst.msk [vmem:[#allocation2 + $0x98] sm:$0xff] %vm262_vm1, %v2840_v25  ;;  %v255_v34 = vld [vmem:[%s2892_s25 + $0xf0] sm:$0xff] }
  0x1a   : > { %2495 = vmatmul.msk.f32.gmra.mxu2 %vm262_vm1, %v242_v4  ;;  %530 = vst.msk [vmem:[#allocation2 + $0xa8] sm:$0xff] %vm262_vm1, %v2840_v25  ;;  %v240_v36 = vld [vmem:[%s2892_s25 + $0x78] sm:$0xff]  ;;  %v596_v41 = vld [vmem:[#allocation2] sm:$0xff]  ;;  %v597_v48 = vld [vmem:[#allocation2 + $0x8] sm:$0xff] }
  0x1b   : > { %531 = vst.msk [vmem:[#allocation2 + $0xb0] sm:$0xff] %vm262_vm1, %v2840_v25  ;;  %v256_v37 = vld [vmem:[%s2892_s25 + $0xf8] sm:$0xff]  ;;  %v1125_v42 = vld [vmem:[#allocation2 + $0x1] sm:$0xff] }
  0x1c   : > { %533 = vst.msk [vmem:[#allocation2 + $0xc0] sm:$0xff] %vm262_vm1, %v2840_v25 }
  0x1d   : > { %534 = vst.msk [vmem:[#allocation2 + $0xc8] sm:$0xff] %vm262_vm1, %v2840_v25 }
  0x1e   : > { %536 = vst.msk [vmem:[#allocation2 + $0xd8] sm:$0xff] %vm262_vm1, %v2840_v25 }
  0x1f   : > { %537 = vst.msk [vmem:[#allocation2 + $0xe0] sm:$0xff] %vm262_vm1, %v2840_v25 }
  0x20   : > { %539 = vst.msk [vmem:[#allocation2 + $0xf0] sm:$0xff] %vm262_vm1, %v2840_v25 }
  0x21   : > { %2480 = vmatmul.msk.f32.gmra.mxu0 %vm262_vm1, %v227_v5  ;;  %540 = vst.msk [vmem:[#allocation2 + $0xf8] sm:$0xff] %vm262_vm1, %v2840_v25 }
  0x22   : > { %2496 = vmatmul.msk.f32.gmra.mxu2 %vm262_vm1, %v243_v6  ;;  %542 = vst.msk [vmem:[#allocation2 + $0x108] sm:$0xff] %vm262_vm1, %v2840_v25 }
  0x23   : > { %543 = vst.msk [vmem:[#allocation2 + $0x110] sm:$0xff] %vm262_vm1, %v2840_v25 }
  0x24   : > { %545 = vst.msk [vmem:[#allocation2 + $0x120] sm:$0xff] %vm262_vm1, %v2840_v25 }
  0x25   : > { %546 = vst.msk [vmem:[#allocation2 + $0x128] sm:$0xff] %vm262_vm1, %v2840_v25 }
  0x26   : > { %548 = vst.msk [vmem:[#allocation2 + $0x138] sm:$0xff] %vm262_vm1, %v2840_v25 }
  0x27   : > { %549 = vst.msk [vmem:[#allocation2 + $0x140] sm:$0xff] %vm262_vm1, %v2840_v25 }
  0x28   : > { %551 = vst.msk [vmem:[#allocation2 + $0x150] sm:$0xff] %vm262_vm1, %v2840_v25 }
  0x29   : > { %2481 = vmatmul.msk.f32.gmra.mxu0 %vm262_vm1, %v228_v7  ;;  %552 = vst.msk [vmem:[#allocation2 + $0x158] sm:$0xff] %vm262_vm1, %v2840_v25 }
  0x2a   : > { %2497 = vmatmul.msk.f32.gmra.mxu2 %vm262_vm1, %v244_v8  ;;  %554 = vst.msk [vmem:[#allocation2 + $0x168] sm:$0xff] %vm262_vm1, %v2840_v25 }
  0x2b   : > { %555 = vst.msk [vmem:[#allocation2 + $0x170] sm:$0xff] %vm262_vm1, %v2840_v25 }
  0x2c   : > { %557 = vst.msk [vmem:[#allocation2 + $0x180] sm:$0xff] %vm262_vm1, %v2840_v25 }
  0x2d   : > { %558 = vst.msk [vmem:[#allocation2 + $0x188] sm:$0xff] %vm262_vm1, %v2840_v25 }
  0x2e   : > { %560 = vst.msk [vmem:[#allocation2 + $0x198] sm:$0xff] %vm262_vm1, %v2840_v25 }
  0x2f   : > { %561 = vst.msk [vmem:[#allocation2 + $0x1a0] sm:$0xff] %vm262_vm1, %v2840_v25 }
  0x30   : > { %514 = vst.msk [vmem:[#allocation2 + $0x28] sm:$0x3] %vm510_vm2, %v2840_v25 }
  0x31   : > { %2482 = vmatmul.msk.f32.gmra.mxu0 %vm262_vm1, %v229_v9  ;;  %511 = vst.msk [vmem:[#allocation2 + $0x10] sm:$0x3] %vm510_vm2, %v2840_v25 }
  0x32   : > { %2498 = vmatmul.msk.f32.gmra.mxu2 %vm262_vm1, %v245_v10  ;;  %517 = vst.msk [vmem:[#allocation2 + $0x40] sm:$0x3] %vm510_vm2, %v2840_v25 }
  0x33   : > { %520 = vst.msk [vmem:[#allocation2 + $0x58] sm:$0x3] %vm510_vm2, %v2840_v25 }
  0x34   : > { %523 = vst.msk [vmem:[#allocation2 + $0x70] sm:$0x3] %vm510_vm2, %v2840_v25 }
  0x35   : > { %526 = vst.msk [vmem:[#allocation2 + $0x88] sm:$0x3] %vm510_vm2, %v2840_v25 }
  0x36   : > { %529 = vst.msk [vmem:[#allocation2 + $0xa0] sm:$0x3] %vm510_vm2, %v2840_v25 }
  0x37   : > { %532 = vst.msk [vmem:[#allocation2 + $0xb8] sm:$0x3] %vm510_vm2, %v2840_v25 }
  0x38   : > { %535 = vst.msk [vmem:[#allocation2 + $0xd0] sm:$0x3] %vm510_vm2, %v2840_v25  ;;  %v1126_v49 = vld [vmem:[#allocation2 + $0x9] sm:$0xff] }
  0x39   : > { %2483 = vmatmul.msk.f32.gmra.mxu0 %vm262_vm1, %v230_v11  ;;  %538 = vst.msk [vmem:[#allocation2 + $0xe8] sm:$0x3] %vm510_vm2, %v2840_v25 }
  0x3a   : > { %2499 = vmatmul.msk.f32.gmra.mxu2 %vm262_vm1, %v246_v12  ;;  %541 = vst.msk [vmem:[#allocation2 + $0x100] sm:$0x3] %vm510_vm2, %v2840_v25 }
  0x3b   : > { %544 = vst.msk [vmem:[#allocation2 + $0x118] sm:$0x3] %vm510_vm2, %v2840_v25 }
  0x3c   : > { %547 = vst.msk [vmem:[#allocation2 + $0x130] sm:$0x3] %vm510_vm2, %v2840_v25 }
  0x3d   : > { %550 = vst.msk [vmem:[#allocation2 + $0x148] sm:$0x3] %vm510_vm2, %v2840_v25 }
  0x3e   : > { %553 = vst.msk [vmem:[#allocation2 + $0x160] sm:$0x3] %vm510_vm2, %v2840_v25 }
  0x3f   : > { %556 = vst.msk [vmem:[#allocation2 + $0x178] sm:$0x3] %vm510_vm2, %v2840_v25 }
  0x40   : > { %559 = vst.msk [vmem:[#allocation2 + $0x190] sm:$0x3] %vm510_vm2, %v2840_v25 }
  0x41   : > { %2484 = vmatmul.msk.f32.gmra.mxu0 %vm262_vm1, %v231_v13  ;;  %562 = vst.msk [vmem:[#allocation2 + $0x1a8] sm:$0x3] %vm510_vm2, %v2840_v25 }
  0x42   : > { %2500 = vmatmul.msk.f32.gmra.mxu2 %vm262_vm1, %v247_v14 }
  0x49   : > { %2485 = vmatmul.msk.f32.gmra.mxu0 %vm262_vm1, %v232_v15 }
  0x4a   : > { %2501 = vmatmul.msk.f32.gmra.mxu2 %vm262_vm1, %v248_v16 }
  0x51   : > { %2486 = vmatmul.msk.f32.gmra.mxu0 %vm262_vm1, %v233_v17 }
  0x52   : > { %2502 = vmatmul.msk.f32.gmra.mxu2 %vm262_vm1, %v249_v18 }
  0x59   : > { %2487 = vmatmul.msk.f32.gmra.mxu0 %vm262_vm1, %v234_v19 }
  0x5a   : > { %2503 = vmatmul.msk.f32.gmra.mxu2 %vm262_vm1, %v250_v20 }
  0x61   : > { %2488 = vmatmul.msk.f32.gmra.mxu0 %vm262_vm1, %v235_v21 }
  0x62   : > { %2504 = vmatmul.msk.f32.gmra.mxu2 %vm262_vm1, %v251_v22 }
  0x69   : > { %2489 = vmatmul.msk.f32.gmra.mxu0 %vm262_vm1, %v236_v23 }
  0x6a   : > { %2505 = vmatmul.msk.f32.gmra.mxu2 %vm262_vm1, %v252_v24 }
  0x71   : > { %2490 = vmatmul.msk.f32.gmra.mxu0 %vm262_vm1, %v237_v26 }
  0x72   : > { %2506 = vmatmul.msk.f32.gmra.mxu2 %vm262_vm1, %v253_v27 }
  0x79   : > { %2491 = vmatmul.msk.f32.gmra.mxu0 %vm262_vm1, %v238_v30 }
  0x7a   : > { %2507 = vmatmul.msk.f32.gmra.mxu2 %vm262_vm1, %v254_v31 }
  0x81   : > { %2492 = vmatmul.msk.f32.gmra.mxu0 %vm262_vm1, %v239_v33 }
  0x82   : > { %2508 = vmatmul.msk.f32.gmra.mxu2 %vm262_vm1, %v255_v34 }
  0x89   : > { %2493 = vmatmul.msk.f32.gmra.mxu0 %vm262_vm1, %v240_v36 }
  0x8a   : > { %2509 = vmatmul.msk.f32.gmra.mxu2 %vm262_vm1, %v256_v37 }
  0x8e   : > { %v380_v40 = vpop.f32.mrf.mxu0 }
  0x8f   : > { %v381_v43 = vadd.f32 %v3046_v38, %v380_v40 }
  0x91   : > { %v476_v44 = vmax.f32 %v381_v43, 0.0  ;;  %2613 = vmatmul.msk.f32.vlgmr.msrb.gmra.mxu0 %vm262_vm1, %v1125_v42 }
  0x92   : > { %2545 = vmatmul.msk.f32.vlgmr.msrb.gmra.mxu2 %vm262_vm1, %v596_v41 }
  0x93   : > { %564 = vst.msk [vmem:[#allocation2 + $0x19] sm:$0xff] %vm262_vm1, %v476_v44 }
  0x95   : > { %v428_v45 = vpop.f32.mrf.mxu2 }
  0x96   : > { %v429_v46 = vadd.f32 %v3046_v38, %v428_v45  ;;  %v383_v47 = vpop.f32.mrf.mxu0 }
  0x97   : > { %v384_v51 = vadd.f32 %v3046_v38, %v383_v47 }
  0x98   : > { %v492_v50 = vmax.f32 %v429_v46, 0.0 }
  0x99   : > { %v477_v52 = vmax.f32 %v384_v51, 0.0  ;;  %2614 = vmatmul.msk.f32.gmra.mxu0 %vm262_vm1, %v1126_v49 }
  0x9a   : > { %580 = vst.msk [vmem:[#allocation2 + $0xd9] sm:$0xff] %vm262_vm1, %v492_v50  ;;  %2546 = vmatmul.msk.f32.gmra.mxu2 %vm262_vm1, %v597_v48  ;;  %v598_v53 = vld [vmem:[#allocation2 + $0x18] sm:$0xff] }
  0x9b   : > { %565 = vst.msk [vmem:[#allocation2 + $0x21] sm:$0xff] %vm262_vm1, %v477_v52  ;;  %2512 = vmatmul.msk.f32.vlgmr.msra.gmra.mxu1 %vm262_vm1, %v598_v53  ;;  %v3101_v59 = vld [vmem:[#allocation2 + $0x19] sm:$0xff] }
  0x9d   : > { %v431_v54 = vpop.f32.mrf.mxu2 }
  0x9e   : > { %v432_v55 = vadd.f32 %v3046_v38, %v431_v54  ;;  %v386_v56 = vpop.f32.mrf.mxu0 }
  0x9f   : > { %v387_v58 = vadd.f32 %v3046_v38, %v386_v56 }
  0xa0   : > { %v493_v57 = vmax.f32 %v432_v55, 0.0 }
  0xa1   : > { %v3105_v60 = vld [vmem:[#allocation2 + $0xd8] sm:$0xff]  ;;  %v478_v61 = vmax.f32 %v387_v58, 0.0  ;;  %2615 = vmatmul.msk.f32.gmra.mxu0 %vm262_vm1, %v3101_v59 }
  0xa2   : > { %2528 = vmatmul.msk.f32.vlgmr.msra.gmra.mxu3 %vm262_vm1, %v3105_v60  ;;  %2547 = vmatmul.msk.f32.gmra.mxu2 %vm262_vm1, %v598_v53  ;;  %581 = vst.msk [vmem:[#allocation2 + $0xe1] sm:$0xff] %vm262_vm1, %v493_v57  ;;  %v599_v62 = vld [vmem:[#allocation2 + $0x20] sm:$0xff] }
  0xa3   : > { %566 = vst.msk [vmem:[#allocation2 + $0x31] sm:$0xff] %vm262_vm1, %v478_v61  ;;  %2513 = vmatmul.msk.f32.gmra.mxu1 %vm262_vm1, %v599_v62  ;;  %v3119_v4 = vld [vmem:[#allocation2 + $0x21] sm:$0xff] }
  0xa5   : > { %v434_v63 = vpop.f32.mrf.mxu2 }
  0xa6   : > { %v435_v0 = vadd.f32 %v3046_v38, %v434_v63  ;;  %v389_v1 = vpop.f32.mrf.mxu0 }
  0xa7   : > { %v390_v3 = vadd.f32 %v3046_v38, %v389_v1 }
  0xa8   : > { %v494_v2 = vmax.f32 %v435_v0, 0.0 }
  0xa9   : > { %v479_v5 = vmax.f32 %v390_v3, 0.0  ;;  %v3122_v6 = vld [vmem:[#allocation2 + $0xe0] sm:$0xff]  ;;  %2616 = vmatmul.msk.f32.gmra.mxu0 %vm262_vm1, %v3119_v4 }
  0xaa   : > { %582 = vst.msk [vmem:[#allocation2 + $0xf1] sm:$0xff] %vm262_vm1, %v494_v2  ;;  %2548 = vmatmul.msk.f32.gmra.mxu2 %vm262_vm1, %v599_v62  ;;  %2529 = vmatmul.msk.f32.gmra.mxu3 %vm262_vm1, %v3122_v6  ;;  %v3129_v7 = vld [vmem:[#allocation2 + $0x30] sm:$0xff] }
  0xab   : > { %567 = vst.msk [vmem:[#allocation2 + $0x39] sm:$0xff] %vm262_vm1, %v479_v5  ;;  %2514 = vmatmul.msk.f32.gmra.mxu1 %vm262_vm1, %v3129_v7  ;;  %v3136_v13 = vld [vmem:[#allocation2 + $0x31] sm:$0xff] }
  0xad   : > { %v437_v8 = vpop.f32.mrf.mxu2 }
  0xae   : > { %v438_v9 = vadd.f32 %v3046_v38, %v437_v8  ;;  %v392_v10 = vpop.f32.mrf.mxu0 }
  0xaf   : > { %v393_v12 = vadd.f32 %v3046_v38, %v392_v10 }
  0xb0   : > { %v495_v11 = vmax.f32 %v438_v9, 0.0 }
  0xb1   : > { %v3138_v14 = vld [vmem:[#allocation2 + $0xf0] sm:$0xff]  ;;  %v480_v15 = vmax.f32 %v393_v12, 0.0  ;;  %2617 = vmatmul.msk.f32.gmra.mxu0 %vm262_vm1, %v3136_v13 }
  0xb2   : > { %583 = vst.msk [vmem:[#allocation2 + $0xf9] sm:$0xff] %vm262_vm1, %v495_v11  ;;  %2549 = vmatmul.msk.f32.gmra.mxu2 %vm262_vm1, %v3129_v7  ;;  %2530 = vmatmul.msk.f32.gmra.mxu3 %vm262_vm1, %v3138_v14  ;;  %v3147_v16 = vld [vmem:[#allocation2 + $0x38] sm:$0xff] }
  0xb3   : > { %568 = vst.msk [vmem:[#allocation2 + $0x49] sm:$0xff] %vm262_vm1, %v480_v15  ;;  %2515 = vmatmul.msk.f32.gmra.mxu1 %vm262_vm1, %v3147_v16  ;;  %v3154_v22 = vld [vmem:[#allocation2 + $0x39] sm:$0xff] }
  0xb5   : > { %v440_v17 = vpop.f32.mrf.mxu2 }
  0xb6   : > { %v441_v18 = vadd.f32 %v3046_v38, %v440_v17  ;;  %v395_v19 = vpop.f32.mrf.mxu0 }
  0xb7   : > { %v396_v21 = vadd.f32 %v3046_v38, %v395_v19 }
  0xb8   : > { %v496_v20 = vmax.f32 %v441_v18, 0.0 }
  0xb9   : > { %v3156_v23 = vld [vmem:[#allocation2 + $0xf8] sm:$0xff]  ;;  %v481_v24 = vmax.f32 %v396_v21, 0.0  ;;  %2618 = vmatmul.msk.f32.gmra.mxu0 %vm262_vm1, %v3154_v22 }
  0xba   : > { %584 = vst.msk [vmem:[#allocation2 + $0x109] sm:$0xff] %vm262_vm1, %v496_v20  ;;  %2550 = vmatmul.msk.f32.gmra.mxu2 %vm262_vm1, %v3147_v16  ;;  %2531 = vmatmul.msk.f32.gmra.mxu3 %vm262_vm1, %v3156_v23  ;;  %v3165_v25 = vld [vmem:[#allocation2 + $0x48] sm:$0xff] }
  0xbb   : > { %569 = vst.msk [vmem:[#allocation2 + $0x51] sm:$0xff] %vm262_vm1, %v481_v24  ;;  %2516 = vmatmul.msk.f32.gmra.mxu1 %vm262_vm1, %v3165_v25  ;;  %v3172_v31 = vld [vmem:[#allocation2 + $0x49] sm:$0xff] }
  0xbd   : > { %v443_v26 = vpop.f32.mrf.mxu2 }
  0xbe   : > { %v444_v27 = vadd.f32 %v3046_v38, %v443_v26  ;;  %v398_v28 = vpop.f32.mrf.mxu0 }
  0xbf   : > { %v399_v30 = vadd.f32 %v3046_v38, %v398_v28 }
  0xc0   : > { %v497_v29 = vmax.f32 %v444_v27, 0.0 }
  0xc1   : > { %v3174_v32 = vld [vmem:[#allocation2 + $0x108] sm:$0xff]  ;;  %v482_v33 = vmax.f32 %v399_v30, 0.0  ;;  %2619 = vmatmul.msk.f32.gmra.mxu0 %vm262_vm1, %v3172_v31 }
  0xc2   : > { %585 = vst.msk [vmem:[#allocation2 + $0x111] sm:$0xff] %vm262_vm1, %v497_v29  ;;  %2551 = vmatmul.msk.f32.gmra.mxu2 %vm262_vm1, %v3165_v25  ;;  %2532 = vmatmul.msk.f32.gmra.mxu3 %vm262_vm1, %v3174_v32  ;;  %v3183_v34 = vld [vmem:[#allocation2 + $0x50] sm:$0xff] }
  0xc3   : > { %570 = vst.msk [vmem:[#allocation2 + $0x61] sm:$0xff] %vm262_vm1, %v482_v33  ;;  %2517 = vmatmul.msk.f32.gmra.mxu1 %vm262_vm1, %v3183_v34  ;;  %v3190_v41 = vld [vmem:[#allocation2 + $0x51] sm:$0xff] }
  0xc5   : > { %v446_v35 = vpop.f32.mrf.mxu2 }
  0xc6   : > { %v447_v36 = vadd.f32 %v3046_v38, %v446_v35  ;;  %v401_v37 = vpop.f32.mrf.mxu0 }
  0xc7   : > { %v402_v40 = vadd.f32 %v3046_v38, %v401_v37 }
  0xc8   : > { %v498_v39 = vmax.f32 %v447_v36, 0.0 }
  0xc9   : > { %v3192_v42 = vld [vmem:[#allocation2 + $0x110] sm:$0xff]  ;;  %v483_v43 = vmax.f32 %v402_v40, 0.0  ;;  %2620 = vmatmul.msk.f32.gmra.mxu0 %vm262_vm1, %v3190_v41 }
  0xca   : > { %586 = vst.msk [vmem:[#allocation2 + $0x121] sm:$0xff] %vm262_vm1, %v498_v39  ;;  %2552 = vmatmul.msk.f32.gmra.mxu2 %vm262_vm1, %v3183_v34  ;;  %2533 = vmatmul.msk.f32.gmra.mxu3 %vm262_vm1, %v3192_v42  ;;  %v3201_v44 = vld [vmem:[#allocation2 + $0x60] sm:$0xff] }
  0xcb   : > { %571 = vst.msk [vmem:[#allocation2 + $0x69] sm:$0xff] %vm262_vm1, %v483_v43  ;;  %2518 = vmatmul.msk.f32.gmra.mxu1 %vm262_vm1, %v3201_v44  ;;  %v3208_v50 = vld [vmem:[#allocation2 + $0x61] sm:$0xff] }
  0xcd   : > { %v449_v45 = vpop.f32.mrf.mxu2 }
  0xce   : > { %v450_v46 = vadd.f32 %v3046_v38, %v449_v45  ;;  %v404_v47 = vpop.f32.mrf.mxu0 }
  0xcf   : > { %v405_v49 = vadd.f32 %v3046_v38, %v404_v47 }
  0xd0   : > { %v499_v48 = vmax.f32 %v450_v46, 0.0 }
  0xd1   : > { %v3210_v51 = vld [vmem:[#allocation2 + $0x120] sm:$0xff]  ;;  %v484_v52 = vmax.f32 %v405_v49, 0.0  ;;  %2621 = vmatmul.msk.f32.gmra.mxu0 %vm262_vm1, %v3208_v50 }
  0xd2   : > { %587 = vst.msk [vmem:[#allocation2 + $0x129] sm:$0xff] %vm262_vm1, %v499_v48  ;;  %2553 = vmatmul.msk.f32.gmra.mxu2 %vm262_vm1, %v3201_v44  ;;  %2534 = vmatmul.msk.f32.gmra.mxu3 %vm262_vm1, %v3210_v51  ;;  %v3219_v53 = vld [vmem:[#allocation2 + $0x68] sm:$0xff] }
  0xd3   : > { %572 = vst.msk [vmem:[#allocation2 + $0x79] sm:$0xff] %vm262_vm1, %v484_v52  ;;  %2519 = vmatmul.msk.f32.gmra.mxu1 %vm262_vm1, %v3219_v53  ;;  %v3226_v61 = vld [vmem:[#allocation2 + $0x69] sm:$0xff] }
  0xd5   : > { %v452_v54 = vpop.f32.mrf.mxu2 }
  0xd6   : > { %v453_v55 = vadd.f32 %v3046_v38, %v452_v54  ;;  %v407_v56 = vpop.f32.mrf.mxu0 }
  0xd7   : > { %v408_v58 = vadd.f32 %v3046_v38, %v407_v56 }
  0xd8   : > { %v500_v57 = vmax.f32 %v453_v55, 0.0 }
  0xd9   : > { %v3228_v62 = vld [vmem:[#allocation2 + $0x128] sm:$0xff]  ;;  %v485_v63 = vmax.f32 %v408_v58, 0.0  ;;  %2622 = vmatmul.msk.f32.gmra.mxu0 %vm262_vm1, %v3226_v61 }
  0xda   : > { %588 = vst.msk [vmem:[#allocation2 + $0x139] sm:$0xff] %vm262_vm1, %v500_v57  ;;  %2554 = vmatmul.msk.f32.gmra.mxu2 %vm262_vm1, %v3219_v53  ;;  %2535 = vmatmul.msk.f32.gmra.mxu3 %vm262_vm1, %v3228_v62  ;;  %v3237_v0 = vld [vmem:[#allocation2 + $0x78] sm:$0xff] }
  0xdb   : > { %573 = vst.msk [vmem:[#allocation2 + $0x81] sm:$0xff] %vm262_vm1, %v485_v63  ;;  %2520 = vmatmul.msk.f32.gmra.mxu1 %vm262_vm1, %v3237_v0  ;;  %v3244_v9 = vld [vmem:[#allocation2 + $0x79] sm:$0xff] }
  0xdd   : > { %v455_v1 = vpop.f32.mrf.mxu2 }
  0xde   : > { %v456_v2 = vadd.f32 %v3046_v38, %v455_v1  ;;  %v410_v3 = vpop.f32.mrf.mxu0 }
  0xdf   : > { %v411_v8 = vadd.f32 %v3046_v38, %v410_v3  ;;  %v2679_v3 = vld [vmem:[%s4496_s3 + $0x1c] sm:$0xf] }
  0xe0   : > { %v501_v5 = vmax.f32 %v456_v2, 0.0  ;;  %2680 = vmatpush.msk.msra.mxu2 %vm359_vm0, %v2679_v3 }
  0xe1   : > { %v3246_v10 = vld [vmem:[#allocation2 + $0x138] sm:$0xff]  ;;  %v486_v11 = vmax.f32 %v411_v8, 0.0  ;;  %2623 = vmatmul.msk.f32.gmra.mxu0 %vm262_vm1, %v3244_v9 }
  0xe2   : > { %589 = vst.msk [vmem:[#allocation2 + $0x141] sm:$0xff] %vm262_vm1, %v501_v5  ;;  %2555 = vmatmul.msk.f32.gmra.mxu2 %vm262_vm1, %v3237_v0  ;;  %2536 = vmatmul.msk.f32.gmra.mxu3 %vm262_vm1, %v3246_v10  ;;  %v3255_v12 = vld [vmem:[#allocation2 + $0x80] sm:$0xff] }
  0xe3   : > { %574 = vst.msk [vmem:[#allocation2 + $0x91] sm:$0xff] %vm262_vm1, %v486_v11  ;;  %2521 = vmatmul.msk.f32.gmra.mxu1 %vm262_vm1, %v3255_v12  ;;  %v3262_v21 = vld [vmem:[#allocation2 + $0x81] sm:$0xff] }
  0xe5   : > { %v458_v15 = vpop.f32.mrf.mxu2 }
  0xe6   : > { %v459_v17 = vadd.f32 %v3046_v38, %v458_v15  ;;  %v413_v18 = vpop.f32.mrf.mxu0  ;;  %v2713_v15 = vld [vmem:[%s4496_s3 + $0x8] sm:$0xf] }
  0xe7   : > { %v414_v20 = vadd.f32 %v3046_v38, %v413_v18  ;;  %2714 = vmatpush.msk.msra.mxu3 %vm359_vm0, %v2713_v15 }
  0xe8   : > { %v502_v19 = vmax.f32 %v459_v17, 0.0 }
  0xe9   : > { %v3264_v24 = vld [vmem:[#allocation2 + $0x140] sm:$0xff]  ;;  %v487_v26 = vmax.f32 %v414_v20, 0.0  ;;  %2624 = vmatmul.msk.f32.gmra.mxu0 %vm262_vm1, %v3262_v21 }
  0xea   : > { %590 = vst.msk [vmem:[#allocation2 + $0x151] sm:$0xff] %vm262_vm1, %v502_v19  ;;  %2556 = vmatmul.msk.f32.gmra.mxu2 %vm262_vm1, %v3255_v12  ;;  %2537 = vmatmul.msk.f32.gmra.mxu3 %vm262_vm1, %v3264_v24  ;;  %v3273_v27 = vld [vmem:[#allocation2 + $0x90] sm:$0xff] }
  0xeb   : > { %575 = vst.msk [vmem:[#allocation2 + $0x99] sm:$0xff] %vm262_vm1, %v487_v26  ;;  %2522 = vmatmul.msk.f32.gmra.mxu1 %vm262_vm1, %v3273_v27  ;;  %v3280_v36 = vld [vmem:[#allocation2 + $0x91] sm:$0xff] }
  0xed   : > { %v461_v28 = vpop.f32.mrf.mxu2 }
  0xee   : > { %v462_v29 = vadd.f32 %v3046_v38, %v461_v28  ;;  %v416_v30 = vpop.f32.mrf.mxu0 }
  0xef   : > { %v417_v35 = vadd.f32 %v3046_v38, %v416_v30 }
  0xf0   : > { %v503_v33 = vmax.f32 %v462_v29, 0.0 }
  0xf1   : > { %v3282_v37 = vld [vmem:[#allocation2 + $0x150] sm:$0xff]  ;;  %v488_v39 = vmax.f32 %v417_v35, 0.0  ;;  %2625 = vmatmul.msk.f32.gmra.mxu0 %vm262_vm1, %v3280_v36 }
  0xf2   : > { %591 = vst.msk [vmem:[#allocation2 + $0x159] sm:$0xff] %vm262_vm1, %v503_v33  ;;  %2557 = vmatmul.msk.f32.gmra.mxu2 %vm262_vm1, %v3273_v27  ;;  %2538 = vmatmul.msk.f32.gmra.mxu3 %vm262_vm1, %v3282_v37  ;;  %v3291_v40 = vld [vmem:[#allocation2 + $0x98] sm:$0xff]  ;;  %v2747_v35 = vld [vmem:[%s4496_s3 + $0x14] sm:$0xf] }
  0xf3   : > { %576 = vst.msk [vmem:[#allocation2 + $0xa9] sm:$0xff] %vm262_vm1, %v488_v39  ;;  %2523 = vmatmul.msk.f32.gmra.mxu1 %vm262_vm1, %v3291_v40  ;;  %v3298_v49 = vld [vmem:[#allocation2 + $0x99] sm:$0xff]  ;;  %2748 = vmatpush.msk.msra.mxu0 %vm359_vm0, %v2747_v35 }
  0xf4   : > { %v2781_v39 = vld [vmem:[%s4496_s3 + $0x20] sm:$0xf] }
  0xf5   : > { %v464_v43 = vpop.f32.mrf.mxu2  ;;  %2782 = vmatpush.msk.msra.mxu1 %vm359_vm0, %v2781_v39  ;;  %v3446_v39 = vld [vmem:[#allocation2 + $0xf1] sm:$0xff] }
  0xf6   : > { %v465_v45 = vadd.f32 %v3046_v38, %v464_v43  ;;  %v419_v46 = vpop.f32.mrf.mxu0 }
  0xf7   : > { %v420_v48 = vadd.f32 %v3046_v38, %v419_v46 }
  0xf8   : > { %v504_v47 = vmax.f32 %v465_v45, 0.0 }
  0xf9   : > { %v3300_v52 = vld [vmem:[#allocation2 + $0x158] sm:$0xff]  ;;  %v489_v54 = vmax.f32 %v420_v48, 0.0  ;;  %2626 = vmatmul.msk.f32.gmra.mxu0 %vm262_vm1, %v3298_v49 }
  0xfa   : > { %592 = vst.msk [vmem:[#allocation2 + $0x169] sm:$0xff] %vm262_vm1, %v504_v47  ;;  %2558 = vmatmul.msk.f32.gmra.mxu2 %vm262_vm1, %v3291_v40  ;;  %2539 = vmatmul.msk.f32.gmra.mxu3 %vm262_vm1, %v3300_v52  ;;  %v3309_v55 = vld [vmem:[#allocation2 + $0xa8] sm:$0xff] }
  0xfb   : > { %577 = vst.msk [vmem:[#allocation2 + $0xb1] sm:$0xff] %vm262_vm1, %v489_v54  ;;  %2524 = vmatmul.msk.f32.gmra.mxu1 %vm262_vm1, %v3309_v55  ;;  %v3316_v2 = vld [vmem:[#allocation2 + $0xa9] sm:$0xff] }
  0xfd   : > { %v467_v56 = vpop.f32.mrf.mxu2 }
  0xfe   : > { %v468_v57 = vadd.f32 %v3046_v38, %v467_v56  ;;  %v422_v58 = vpop.f32.mrf.mxu0 }
  0xff   : > { %v423_v1 = vadd.f32 %v3046_v38, %v422_v58 }
 0x100   : > { %v505_v63 = vmax.f32 %v468_v57, 0.0 }
 0x101   : > { %v3321_v5 = vld [vmem:[#allocation2 + $0x168] sm:$0xff]  ;;  %v490_v8 = vmax.f32 %v423_v1, 0.0  ;;  %2627 = vmatmul.msk.f32.gmra.mxu0 %vm262_vm1, %v3316_v2 }
 0x102   : > { %593 = vst.msk [vmem:[#allocation2 + $0x171] sm:$0xff] %vm262_vm1, %v505_v63  ;;  %2559 = vmatmul.msk.f32.gmra.mxu2 %vm262_vm1, %v3309_v55  ;;  %2540 = vmatmul.msk.f32.gmra.mxu3 %vm262_vm1, %v3321_v5  ;;  %v3331_v11 = vld [vmem:[#allocation2 + $0xb0] sm:$0xff] }
 0x103   : > { %578 = vst.msk [vmem:[#allocation2 + $0xc1] sm:$0xff] %vm262_vm1, %v490_v8  ;;  %2525 = vmatmul.msk.f32.gmra.mxu1 %vm262_vm1, %v3331_v11  ;;  %v3342_v28 = vld [vmem:[#allocation2 + $0xb1] sm:$0xff] }
 0x105   : > { %v470_v17 = vpop.f32.mrf.mxu2 }
 0x106   : > { %v471_v18 = vadd.f32 %v3046_v38, %v470_v17  ;;  %v425_v19 = vpop.f32.mrf.mxu0  ;;  %v3410_v17 = vld [vmem:[#allocation2 + $0xd9] sm:$0xff] }
 0x107   : > { %v426_v26 = vadd.f32 %v3046_v38, %v425_v19 }
 0x108   : > { %v506_v20 = vmax.f32 %v471_v18, 0.0 }
 0x109   : > { %v3344_v29 = vld [vmem:[#allocation2 + $0x170] sm:$0xff]  ;;  %v491_v30 = vmax.f32 %v426_v26, 0.0  ;;  %2628 = vmatmul.msk.f32.gmra.mxu0 %vm262_vm1, %v3342_v28  ;;  %v3428_v26 = vld [vmem:[#allocation2 + $0xe1] sm:$0xff] }
 0x10a   : > { %594 = vst.msk [vmem:[#allocation2 + $0x181] sm:$0xff] %vm262_vm1, %v506_v20  ;;  %2560 = vmatmul.msk.f32.gmra.mxu2 %vm262_vm1, %v3331_v11  ;;  %2541 = vmatmul.msk.f32.gmra.mxu3 %vm262_vm1, %v3344_v29  ;;  %v3353_v33 = vld [vmem:[#allocation2 + $0xc0] sm:$0xff] }
 0x10b   : > { %579 = vst.msk [vmem:[#allocation2 + $0xc9] sm:$0xff] %vm262_vm1, %v491_v30  ;;  %2526 = vmatmul.msk.f32.gmra.mxu1 %vm262_vm1, %v3353_v33  ;;  %v3369_v48 = vld [vmem:[#allocation2 + $0xc1] sm:$0xff] }
 0x10d   : > { %v473_v43 = vpop.f32.mrf.mxu2 }
 0x10e   : > { %v474_v45 = vadd.f32 %v3046_v38, %v473_v43  ;;  %v3367_v46 = vpop.f32.mrf.mxu0 }
 0x110   : > { %v507_v47 = vmax.f32 %v474_v45, 0.0 }
 0x111   : > { %v3371_v54 = vld [vmem:[#allocation2 + $0x180] sm:$0xff]  ;;  %2629 = vmatmul.msk.f32.gmra.mxu0 %vm262_vm1, %v3369_v48 }
 0x112   : > { %4509 = vst [vmem:[#allocation3_spill] sm:$0xff] %v3371_v54  ;;  %2561 = vmatmul.msk.f32.gmra.mxu2 %vm262_vm1, %v3353_v33  ;;  %2542 = vmatmul.msk.f32.gmra.mxu3 %vm262_vm1, %v3371_v54  ;;  %v3380_v56 = vld [vmem:[#allocation2 + $0xc8] sm:$0xff] }
 0x113   : > { %595 = vst.msk [vmem:[#allocation2 + $0x189] sm:$0xff] %vm262_vm1, %v507_v47  ;;  %2527 = vmatmul.msk.f32.gmra.mxu1 %vm262_vm1, %v3380_v56  ;;  %v3388_v58 = vld [vmem:[#allocation2 + $0xc9] sm:$0xff] }
 0x114   : > { %v3482_v54 = vld [vmem:[#allocation2 + $0x109] sm:$0xff] }
 0x115   : > { %v3384_v38 = vpop.f32.mrf.mxu2 }
 0x116   : > { %v3386_v57 = vpop.f32.mrf.mxu0 }
 0x118   : > { %v3390_v63 = vpop.f32.mrf.mxu1 }
 0x119   : > { %2630 = vmatmul.msk.f32.gmra.mxu0 %vm262_vm1, %v3388_v58 }
 0x11a   : > { %v3392_v1 = vld [vmem:[#allocation2 + $0x188] sm:$0xff]  ;;  %2562 = vmatmul.msk.f32.gmra.mxu2 %vm262_vm1, %v3380_v56 }
 0x11b   : > { %4510 = vst [vmem:[#allocation4_spill] sm:$0xff] %v3392_v1  ;;  %2543 = vmatmul.msk.f32.gmra.mxu3 %vm262_vm1, %v3392_v1  ;;  %2647 = vmatmul.msk.f32.vlgmr.msrb.gmra.mxu1 %vm262_vm1, %v3101_v59 }
 0x11d   : > { %v3402_v3 = vpop.f32.mrf.mxu2 }
 0x11e   : > { %v3404_v8 = vpop.f32.mrf.mxu0 }
 0x120   : > { %v3406_v15 = vpop.f32.mrf.mxu1 }
 0x121   : > { %2631 = vmatmul.msk.f32.gmra.mxu0 %vm262_vm1, %v3410_v17 }
 0x122   : > { %2563 = vmatmul.msk.f32.gmra.mxu2 %vm262_vm1, %v3105_v60 }
 0x123   : > { %2579 = vmatmul.msk.f32.vlgmr.msrb.gmra.mxu3 %vm262_vm1, %v3129_v7  ;;  %2648 = vmatmul.msk.f32.gmra.mxu1 %vm262_vm1, %v3119_v4 }
 0x125   : > { %v3418_v59 = vpop.f32.mrf.mxu3  ;;  %v3420_v18 = vpop.f32.mrf.mxu2 }
 0x126   : > { %4511 = vst [vmem:[#allocation5_spill] sm:$0xff] %v3418_v59  ;;  %v3422_v19 = vpop.f32.mrf.mxu0 }
 0x128   : > { %v3424_v20 = vpop.f32.mrf.mxu1 }
 0x129   : > { %2632 = vmatmul.msk.f32.gmra.mxu0 %vm262_vm1, %v3428_v26 }
 0x12a   : > { %2564 = vmatmul.msk.f32.gmra.mxu2 %vm262_vm1, %v3122_v6 }
 0x12b   : > { %2580 = vmatmul.msk.f32.gmra.mxu3 %vm262_vm1, %v3147_v16  ;;  %2649 = vmatmul.msk.f32.gmra.mxu1 %vm262_vm1, %v3136_v13 }
 0x12d   : > { %v3436_v4 = vpop.f32.mrf.mxu2  ;;  %v3438_v7 = vpop.f32.mrf.mxu3 }
 0x12e   : > { %4512 = vst [vmem:[#allocation6_spill] sm:$0xff] %v3438_v7  ;;  %v3440_v30 = vpop.f32.mrf.mxu0  ;;  %v3464_v7 = vld [vmem:[#allocation2 + $0xf9] sm:$0xff] }
 0x130   : > { %v3442_v35 = vpop.f32.mrf.mxu1 }
 0x131   : > { %2633 = vmatmul.msk.f32.gmra.mxu0 %vm262_vm1, %v3446_v39 }
 0x132   : > { %2565 = vmatmul.msk.f32.gmra.mxu2 %vm262_vm1, %v3138_v14 }
 0x133   : > { %2581 = vmatmul.msk.f32.gmra.mxu3 %vm262_vm1, %v3165_v25  ;;  %2650 = vmatmul.msk.f32.gmra.mxu1 %vm262_vm1, %v3154_v22 }
 0x135   : > { %v3454_v16 = vpop.f32.mrf.mxu2  ;;  %v3456_v43 = vpop.f32.mrf.mxu3 }
 0x136   : > { %4513 = vst [vmem:[#allocation7_spill] sm:$0xff] %v3456_v43  ;;  %v3458_v45 = vpop.f32.mrf.mxu0 }
 0x137   : > { %4514 = vst [vmem:[#allocation8_spill] sm:$0xff] %v3458_v45  ;;  %v3498_v45 = vld [vmem:[#allocation2 + $0x111] sm:$0xff] }
 0x138   : > { %v3460_v47 = vpop.f32.mrf.mxu1 }
 0x139   : > { %2634 = vmatmul.msk.f32.gmra.mxu0 %vm262_vm1, %v3464_v7 }
 0x13a   : > { %2566 = vmatmul.msk.f32.gmra.mxu2 %vm262_vm1, %v3156_v23 }
 0x13b   : > { %2582 = vmatmul.msk.f32.gmra.mxu3 %vm262_vm1, %v3183_v34  ;;  %2651 = vmatmul.msk.f32.gmra.mxu1 %vm262_vm1, %v3172_v31 }
 0x13d   : > { %v3472_v25 = vpop.f32.mrf.mxu2  ;;  %v3474_v43 = vpop.f32.mrf.mxu3 }
 0x13e   : > { %4515 = vst [vmem:[#allocation9_spill] sm:$0xff] %v3472_v25  ;;  %v3476_v59 = vpop.f32.mrf.mxu0 }
 0x13f   : > { %4516 = vst [vmem:[#allocation10_spill] sm:$0xff] %v3474_v43 }
 0x140   : > { %4517 = vst [vmem:[#allocation11_spill] sm:$0xff] %v3476_v59  ;;  %v3478_v1 = vpop.f32.mrf.mxu1 }
 0x141   : > { %2635 = vmatmul.msk.f32.gmra.mxu0 %vm262_vm1, %v3482_v54 }
 0x142   : > { %2567 = vmatmul.msk.f32.gmra.mxu2 %vm262_vm1, %v3174_v32 }
 0x143   : > { %2583 = vmatmul.msk.f32.gmra.mxu3 %vm262_vm1, %v3201_v44  ;;  %2652 = vmatmul.msk.f32.gmra.mxu1 %vm262_vm1, %v3190_v41 }
 0x145   : > { %v3490_v34 = vpop.f32.mrf.mxu2  ;;  %v3492_v43 = vpop.f32.mrf.mxu3 }
 0x146   : > { %4518 = vst [vmem:[#allocation12_spill] sm:$0xff] %v3490_v34  ;;  %v3500_v25 = vpop.f32.mrf.mxu0 }
 0x147   : > { %4519 = vst [vmem:[#allocation13_spill] sm:$0xff] %v3492_v43 }
 0x148   : > { %v3494_v59 = vpop.f32.mrf.mxu1  ;;  %4521 = vst [vmem:[#allocation15_spill] sm:$0xff] %v3500_v25 }
 0x149   : > { %4520 = vst [vmem:[#allocation14_spill] sm:$0xff] %v3494_v59  ;;  %2636 = vmatmul.msk.f32.gmra.mxu0 %vm262_vm1, %v3498_v45  ;;  %v3516_v59 = vld [vmem:[#allocation2 + $0x121] sm:$0xff] }
 0x14a   : > { %2568 = vmatmul.msk.f32.gmra.mxu2 %vm262_vm1, %v3192_v42 }
 0x14b   : > { %2584 = vmatmul.msk.f32.gmra.mxu3 %vm262_vm1, %v3219_v53  ;;  %2653 = vmatmul.msk.f32.gmra.mxu1 %vm262_vm1, %v3208_v50 }
 0x14d   : > { %v3508_v44 = vpop.f32.mrf.mxu2  ;;  %v3510_v43 = vpop.f32.mrf.mxu3 }
 0x14e   : > { %4522 = vst [vmem:[#allocation16_spill] sm:$0xff] %v3508_v44  ;;  %v3524_v53 = vpop.f32.mrf.mxu0 }
 0x14f   : > { %4523 = vst [vmem:[#allocation17_spill] sm:$0xff] %v3510_v43 }
 0x150   : > { %v3512_v34 = vpop.f32.mrf.mxu1  ;;  %4525 = vst [vmem:[#allocation19_spill] sm:$0xff] %v3524_v53 }
 0x151   : > { %4524 = vst [vmem:[#allocation18_spill] sm:$0xff] %v3512_v34  ;;  %2637 = vmatmul.msk.f32.gmra.mxu0 %vm262_vm1, %v3516_v59  ;;  %v3534_v34 = vld [vmem:[#allocation2 + $0x129] sm:$0xff] }
 0x152   : > { %2569 = vmatmul.msk.f32.gmra.mxu2 %vm262_vm1, %v3210_v51 }
 0x153   : > { %2585 = vmatmul.msk.f32.gmra.mxu3 %vm262_vm1, %v3237_v0  ;;  %2654 = vmatmul.msk.f32.gmra.mxu1 %vm262_vm1, %v3226_v61 }
 0x155   : > { %v3526_v25 = vpop.f32.mrf.mxu2  ;;  %v3528_v43 = vpop.f32.mrf.mxu3 }
 0x156   : > { %4526 = vst [vmem:[#allocation20_spill] sm:$0xff] %v3526_v25 }
 0x157   : > { %4527 = vst [vmem:[#allocation21_spill] sm:$0xff] %v3528_v43  ;;  %v3546_v43 = vpop.f32.mrf.mxu0 }
 0x158   : > { %v3530_v44 = vpop.f32.mrf.mxu1  ;;  %4531 = vst [vmem:[#allocation25_spill] sm:$0xff] %v3546_v43 }
 0x159   : > { %4528 = vst [vmem:[#allocation22_spill] sm:$0xff] %v3530_v44  ;;  %2638 = vmatmul.msk.f32.gmra.mxu0 %vm262_vm1, %v3534_v34  ;;  %v3552_v44 = vld [vmem:[#allocation2 + $0x139] sm:$0xff] }
 0x15a   : > { %2570 = vmatmul.msk.f32.gmra.mxu2 %vm262_vm1, %v3228_v62 }
 0x15b   : > { %2586 = vmatmul.msk.f32.gmra.mxu3 %vm262_vm1, %v3255_v12  ;;  %2655 = vmatmul.msk.f32.gmra.mxu1 %vm262_vm1, %v3244_v9 }
 0x15d   : > { %v3542_v0 = vpop.f32.mrf.mxu2  ;;  %v3544_v53 = vpop.f32.mrf.mxu3 }
 0x15e   : > { %4529 = vst [vmem:[#allocation23_spill] sm:$0xff] %v3542_v0 }
 0x15f   : > { %4530 = vst [vmem:[#allocation24_spill] sm:$0xff] %v3544_v53  ;;  %v3564_v43 = vpop.f32.mrf.mxu0 }
 0x160   : > { %v3548_v25 = vpop.f32.mrf.mxu1  ;;  %4535 = vst [vmem:[#allocation29_spill] sm:$0xff] %v3564_v43 }
 0x161   : > { %4532 = vst [vmem:[#allocation26_spill] sm:$0xff] %v3548_v25  ;;  %2639 = vmatmul.msk.f32.gmra.mxu0 %vm262_vm1, %v3552_v44  ;;  %v3570_v25 = vld [vmem:[#allocation2 + $0x141] sm:$0xff] }
 0x162   : > { %2571 = vmatmul.msk.f32.gmra.mxu2 %vm262_vm1, %v3246_v10 }
 0x163   : > { %2587 = vmatmul.msk.f32.gmra.mxu3 %vm262_vm1, %v3273_v27  ;;  %2656 = vmatmul.msk.f32.gmra.mxu1 %vm262_vm1, %v3262_v21 }
 0x165   : > { %v3560_v12 = vpop.f32.mrf.mxu2  ;;  %v3562_v53 = vpop.f32.mrf.mxu3 }
 0x166   : > { %4533 = vst [vmem:[#allocation27_spill] sm:$0xff] %v3560_v12  ;;  %v3586_v12 = vld [vmem:[#allocation2 + $0x151] sm:$0xff] }
 0x167   : > { %4534 = vst [vmem:[#allocation28_spill] sm:$0xff] %v3562_v53 }
 0x168   : > { %v3566_v0 = vpop.f32.mrf.mxu1 }
 0x169   : > { %4536 = vst [vmem:[#allocation30_spill] sm:$0xff] %v3566_v0  ;;  %2640 = vmatmul.msk.f32.gmra.mxu0 %vm262_vm1, %v3570_v25  ;;  %v3588_v0 = vpop.f32.mrf.mxu0 }
 0x16a   : > { %2572 = vmatmul.msk.f32.gmra.mxu2 %vm262_vm1, %v3264_v24  ;;  %4540 = vst [vmem:[#allocation34_spill] sm:$0xff] %v3588_v0  ;;  %v3622_v0 = vld [vmem:[#allocation2 + $0x169] sm:$0xff] }
 0x16b   : > { %2588 = vmatmul.msk.f32.gmra.mxu3 %vm262_vm1, %v3291_v40  ;;  %2657 = vmatmul.msk.f32.gmra.mxu1 %vm262_vm1, %v3280_v36 }
 0x16d   : > { %v3578_v27 = vpop.f32.mrf.mxu2  ;;  %v3580_v53 = vpop.f32.mrf.mxu3 }
 0x16e   : > { %4537 = vst [vmem:[#allocation31_spill] sm:$0xff] %v3578_v27 }
 0x16f   : > { %4538 = vst [vmem:[#allocation32_spill] sm:$0xff] %v3580_v53 }
 0x170   : > { %v3582_v43 = vpop.f32.mrf.mxu1 }
 0x171   : > { %4539 = vst [vmem:[#allocation33_spill] sm:$0xff] %v3582_v43  ;;  %2641 = vmatmul.msk.f32.gmra.mxu0 %vm262_vm1, %v3586_v12  ;;  %v3604_v43 = vld [vmem:[#allocation2 + $0x159] sm:$0xff] }
 0x172   : > { %2573 = vmatmul.msk.f32.gmra.mxu2 %vm262_vm1, %v3282_v37 }
 0x173   : > { %2589 = vmatmul.msk.f32.gmra.mxu3 %vm262_vm1, %v3309_v55  ;;  %2658 = vmatmul.msk.f32.gmra.mxu1 %vm262_vm1, %v3298_v49  ;;  %v3612_v55 = vpop.f32.mrf.mxu0 }
 0x174   : > { %4544 = vst [vmem:[#allocation38_spill] sm:$0xff] %v3612_v55  ;;  %v3640_v55 = vld [vmem:[#allocation2 + $0x171] sm:$0xff] }
 0x175   : > { %v3596_v40 = vpop.f32.mrf.mxu2  ;;  %v3598_v53 = vpop.f32.mrf.mxu3 }
 0x176   : > { %4541 = vst [vmem:[#allocation35_spill] sm:$0xff] %v3596_v40 }
 0x177   : > { %4542 = vst [vmem:[#allocation36_spill] sm:$0xff] %v3598_v53 }
 0x178   : > { %v3600_v27 = vpop.f32.mrf.mxu1 }
 0x179   : > { %4543 = vst [vmem:[#allocation37_spill] sm:$0xff] %v3600_v27  ;;  %2642 = vmatmul.msk.f32.gmra.mxu0 %vm262_vm1, %v3604_v43 }
 0x17a   : > { %2574 = vmatmul.msk.f32.gmra.mxu2 %vm262_vm1, %v3300_v52 }
 0x17b   : > { %2590 = vmatmul.msk.f32.gmra.mxu3 %vm262_vm1, %v3331_v11  ;;  %2659 = vmatmul.msk.f32.gmra.mxu1 %vm262_vm1, %v3316_v2 }
 0x17d   : > { %v3614_v40 = vpop.f32.mrf.mxu2  ;;  %v3616_v53 = vpop.f32.mrf.mxu3 }
 0x17e   : > { %4545 = vst [vmem:[#allocation39_spill] sm:$0xff] %v3614_v40 }
 0x17f   : > { %4546 = vst [vmem:[#allocation40_spill] sm:$0xff] %v3616_v53  ;;  %v3634_v53 = vpop.f32.mrf.mxu0 }
 0x180   : > { %v3618_v27 = vpop.f32.mrf.mxu1  ;;  %4550 = vst [vmem:[#allocation44_spill] sm:$0xff] %v3634_v53  ;;  %v3658_v53 = vld [vmem:[#allocation2 + $0x1a] sm:$0xff] }
 0x181   : > { %4547 = vst [vmem:[#allocation41_spill] sm:$0xff] %v3618_v27  ;;  %2643 = vmatmul.msk.f32.gmra.mxu0 %vm262_vm1, %v3622_v0 }
 0x182   : > { %2575 = vmatmul.msk.f32.gmra.mxu2 %vm262_vm1, %v3321_v5  ;;  %4555 = vst [vmem:[#allocation49_spill] sm:$0xff] %v3658_v53 }
 0x183   : > { %2591 = vmatmul.msk.f32.gmra.mxu3 %vm262_vm1, %v3353_v33  ;;  %2660 = vmatmul.msk.f32.gmra.mxu1 %vm262_vm1, %v3342_v28 }
 0x185   : > { %v3630_v11 = vpop.f32.mrf.mxu2  ;;  %v3632_v40 = vpop.f32.mrf.mxu3 }
 0x186   : > { %4548 = vst [vmem:[#allocation42_spill] sm:$0xff] %v3630_v11 }
 0x187   : > { %4549 = vst [vmem:[#allocation43_spill] sm:$0xff] %v3632_v40  ;;  %v3652_v11 = vpop.f32.mrf.mxu0 }
 0x188   : > { %v3636_v27 = vpop.f32.mrf.mxu1 }
 0x189   : > { %4551 = vst [vmem:[#allocation45_spill] sm:$0xff] %v3636_v27  ;;  %2644 = vmatmul.msk.f32.gmra.mxu0 %vm262_vm1, %v3640_v55 }
 0x18a   : > { %2576 = vmatmul.msk.f32.gmra.mxu2 %vm262_vm1, %v3344_v29 }
 0x18b   : > { %2592 = vmatmul.msk.f32.gmra.mxu3 %vm262_vm1, %v3380_v56  ;;  %2661 = vmatmul.msk.f32.gmra.mxu1 %vm262_vm1, %v3369_v48 }
 0x18d   : > { %v3648_v33 = vpop.f32.mrf.mxu2  ;;  %v3650_v40 = vpop.f32.mrf.mxu3 }
 0x18e   : > { %4552 = vst [vmem:[#allocation46_spill] sm:$0xff] %v3648_v33 }
 0x18f   : > { %4553 = vst [vmem:[#allocation47_spill] sm:$0xff] %v3650_v40 }
 0x190   : > { %v3654_v27 = vpop.f32.mrf.mxu1 }
 0x191   : > { %4554 = vst [vmem:[#allocation48_spill] sm:$0xff] %v3654_v27  ;;  %2749 = vmatmul.msk.f32.vlgmr.msra.gmra.mxu0 %vm262_vm1, %v3658_v53  ;;  %v3674_v27 = vpop.f32.mrf.mxu0 }
 0x192   : > { %2681 = vmatmul.msk.f32.vlgmr.msra.gmra.mxu2 %vm262_vm1, %v3136_v13  ;;  %v3672_v13 = vld [vmem:[#allocation2 + $0x22] sm:$0xff]  ;;  %4559 = vst [vmem:[#allocation53_spill] sm:$0xff] %v3674_v27 }
 0x193   : > { %2593 = vmatmul.msk.f32.gmra.mxu3 %vm262_vm1, %v3105_v60  ;;  %2662 = vmatmul.msk.f32.gmra.mxu1 %vm262_vm1, %v3388_v58  ;;  %4558 = vst [vmem:[#allocation52_spill] sm:$0xff] %v3672_v13 }
 0x195   : > { %v3666_v56 = vpop.f32.mrf.mxu2  ;;  %v3668_v40 = vpop.f32.mrf.mxu3 }
 0x196   : > { %4556 = vst [vmem:[#allocation50_spill] sm:$0xff] %v3666_v56 }
 0x197   : > { %4557 = vst [vmem:[#allocation51_spill] sm:$0xff] %v3668_v40 }
 0x198   : > { %v1435_v33 = vpop.f32.mrf.mxu1 }
 0x199   : > { %2750 = vmatmul.msk.f32.gmra.mxu0 %vm262_vm1, %v3672_v13  ;;  %v3698_v13 = vpop.f32.mrf.mxu0 }
 0x19a   : > { %2682 = vmatmul.msk.f32.gmra.mxu2 %vm262_vm1, %v3154_v22  ;;  %v3688_v22 = vld [vmem:[#allocation2 + $0x32] sm:$0xff] }
 0x19b   : > { %2594 = vmatmul.msk.f32.gmra.mxu3 %vm262_vm1, %v3122_v6  ;;  %2663 = vmatmul.msk.f32.gmra.mxu1 %vm262_vm1, %v3410_v17  ;;  %v874_v6 = vadd.f32 %v3384_v38, %v3390_v63 }
 0x19d   : > { %v3682_v60 = vpop.f32.mrf.mxu2 }
 0x19e   : > { %4560 = vst [vmem:[#allocation54_spill] sm:$0xff] %v3682_v60  ;;  %v3684_v40 = vpop.f32.mrf.mxu3 }
 0x19f   : > { %4561 = vst [vmem:[#allocation55_spill] sm:$0xff] %v3684_v40 }
 0x1a0   : > { %v1438_v53 = vpop.f32.mrf.mxu1 }
 0x1a1   : > { %2751 = vmatmul.msk.f32.gmra.mxu0 %vm262_vm1, %v3688_v22 }
 0x1a2   : > { %2683 = vmatmul.msk.f32.gmra.mxu2 %vm262_vm1, %v3172_v31 }
 0x1a3   : > { %2595 = vmatmul.msk.f32.gmra.mxu3 %vm262_vm1, %v3138_v14  ;;  %2664 = vmatmul.msk.f32.gmra.mxu1 %vm262_vm1, %v3428_v26  ;;  %v3705_v14 = vld [vmem:[#allocation2 + $0x3a] sm:$0xff] }
 0x1a5   : > { %v3700_v40 = vpop.f32.mrf.mxu2 }
 0x1a6   : > { %v997_v60 = vpop.f32.mrf.mxu3 }
 0x1a7   : > { %v1093_v31 = vadd.f32 %v997_v60, %v874_v6 }
 0x1a8   : > { %v1441_v27 = vpop.f32.mrf.mxu1 }
 0x1a9   : > { %v1375_v56 = vadd.f32 %v3367_v46, %v1093_v31  ;;  %2752 = vmatmul.msk.f32.gmra.mxu0 %vm262_vm1, %v3705_v14  ;;  %v877_v46 = vadd.f32 %v3402_v3, %v3406_v15 }
 0x1aa   : > { %2684 = vmatmul.msk.f32.gmra.mxu2 %vm262_vm1, %v3190_v41  ;;  %v3719_v41 = vpop.f32.mrf.mxu0 }
 0x1ab   : > { %2596 = vmatmul.msk.f32.gmra.mxu3 %vm262_vm1, %v3156_v23  ;;  %v3711_v38 = vadd.f32 %v1435_v33, %v1375_v56  ;;  %2665 = vmatmul.msk.f32.gmra.mxu1 %vm262_vm1, %v3446_v39  ;;  %v3724_v33 = vld [vmem:[#allocation2 + $0x4a] sm:$0xff] }
 0x1ad   : > { %v3717_v63 = vpop.f32.mrf.mxu2 }
 0x1ae   : > { %v1000_v60 = vpop.f32.mrf.mxu3 }
 0x1af   : > { %v1094_v6 = vadd.f32 %v1000_v60, %v877_v46 }
 0x1b0   : > { %v1444_v23 = vpop.f32.mrf.mxu1 }
 0x1b1   : > { %v1376_v31 = vadd.f32 %v3386_v57, %v1094_v6  ;;  %2753 = vmatmul.msk.f32.gmra.mxu0 %vm262_vm1, %v3724_v33  ;;  %v880_v57 = vadd.f32 %v3420_v18, %v3424_v20 }
 0x1b2   : > { %2685 = vmatmul.msk.f32.gmra.mxu2 %vm262_vm1, %v3208_v50  ;;  %v3738_v46 = vpop.f32.mrf.mxu0 }
 0x1b3   : > { %2597 = vmatmul.msk.f32.gmra.mxu3 %vm262_vm1, %v3174_v32  ;;  %v3730_v3 = vadd.f32 %v1438_v53, %v1376_v31  ;;  %2666 = vmatmul.msk.f32.gmra.mxu1 %vm262_vm1, %v3464_v7  ;;  %v3743_v53 = vld [vmem:[#allocation2 + $0x52] sm:$0xff] }
 0x1b5   : > { %v3736_v15 = vpop.f32.mrf.mxu2 }
 0x1b6   : > { %v1003_v56 = vpop.f32.mrf.mxu3 }
 0x1b7   : > { %v1095_v50 = vadd.f32 %v1003_v56, %v880_v57 }
 0x1b8   : > { %v1447_v32 = vpop.f32.mrf.mxu1 }
 0x1b9   : > { %v1377_v60 = vadd.f32 %v3404_v8, %v1095_v50  ;;  %2754 = vmatmul.msk.f32.gmra.mxu0 %vm262_vm1, %v3743_v53  ;;  %v883_v8 = vadd.f32 %v3436_v4, %v3442_v35 }
 0x1ba   : > { %2686 = vmatmul.msk.f32.gmra.mxu2 %vm262_vm1, %v3226_v61 }
 0x1bb   : > { %2598 = vmatmul.msk.f32.gmra.mxu3 %vm262_vm1, %v3192_v42  ;;  %v3749_v18 = vadd.f32 %v1441_v27, %v1377_v60  ;;  %2667 = vmatmul.msk.f32.gmra.mxu1 %vm262_vm1, %v3482_v54  ;;  %v3760_v42 = vld [vmem:[#allocation2 + $0x62] sm:$0xff]  ;;  %v3762_v27 = vpop.f32.mrf.mxu0 }
 0x1bd   : > { %v3755_v20 = vpop.f32.mrf.mxu2 }
 0x1be   : > { %v1006_v6 = vpop.f32.mrf.mxu3 }
 0x1bf   : > { %v1096_v61 = vadd.f32 %v1006_v6, %v883_v8 }
 0x1c0   : > { %v1450_v57 = vpop.f32.mrf.mxu1 }
 0x1c1   : > { %v1378_v31 = vadd.f32 %v3422_v19, %v1096_v61  ;;  %2755 = vmatmul.msk.f32.gmra.mxu0 %vm262_vm1, %v3760_v42  ;;  %v886_v19 = vadd.f32 %v3454_v16, %v3460_v47  ;;  %v4562_v16 = vld [vmem:[#allocation9_spill] sm:$0xff]  ;;  %v4564_v61 = vld [vmem:[#allocation8_spill] sm:$0xff] }
 0x1c2   : > { %2687 = vmatmul.msk.f32.gmra.mxu2 %vm262_vm1, %v3244_v9 }
 0x1c3   : > { %2599 = vmatmul.msk.f32.gmra.mxu3 %vm262_vm1, %v3210_v51  ;;  %v3768_v4 = vadd.f32 %v1444_v23, %v1378_v31  ;;  %2668 = vmatmul.msk.f32.gmra.mxu1 %vm262_vm1, %v3498_v45  ;;  %v3779_v51 = vld [vmem:[#allocation2 + $0x6a] sm:$0xff]  ;;  %v3791_v47 = vpop.f32.mrf.mxu0 }
 0x1c5   : > { %v3774_v35 = vpop.f32.mrf.mxu2 }
 0x1c6   : > { %v1009_v9 = vpop.f32.mrf.mxu3 }
 0x1c7   : > { %v1097_v56 = vadd.f32 %v1009_v9, %v886_v19  ;;  %v4565_v19 = vld [vmem:[#allocation14_spill] sm:$0xff]  ;;  %v4566_v9 = vld [vmem:[#allocation12_spill] sm:$0xff] }
 0x1c8   : > { %v1453_v60 = vpop.f32.mrf.mxu1 }
 0x1c9   : > { %v1379_v50 = vadd.f32 %v3440_v30, %v1097_v56  ;;  %2756 = vmatmul.msk.f32.gmra.mxu0 %vm262_vm1, %v3779_v51  ;;  %v889_v30 = vadd.f32 %v4562_v16, %v3478_v1  ;;  %v892_v56 = vadd.f32 %v4566_v9, %v4565_v19  ;;  %v4570_v19 = vld [vmem:[#allocation16_spill] sm:$0xff] }
 0x1ca   : > { %2688 = vmatmul.msk.f32.gmra.mxu2 %vm262_vm1, %v3262_v21 }
 0x1cb   : > { %2600 = vmatmul.msk.f32.gmra.mxu3 %vm262_vm1, %v3228_v62  ;;  %v3785_v23 = vadd.f32 %v1447_v32, %v1379_v50  ;;  %2669 = vmatmul.msk.f32.gmra.mxu1 %vm262_vm1, %v3516_v59  ;;  %v3798_v32 = vld [vmem:[#allocation2 + $0x7a] sm:$0xff] }
 0x1cd   : > { %v3793_v8 = vpop.f32.mrf.mxu2 }
 0x1ce   : > { %4563 = vst [vmem:[#allocation9_spill] sm:$0xff] %v3793_v8  ;;  %v1012_v21 = vpop.f32.mrf.mxu3 }
 0x1cf   : > { %v1098_v6 = vadd.f32 %v1012_v21, %v889_v30  ;;  %v4568_v21 = vld [vmem:[#allocation11_spill] sm:$0xff] }
 0x1d0   : > { %v1456_v62 = vpop.f32.mrf.mxu1 }
 0x1d1   : > { %v1380_v31 = vadd.f32 %v4564_v61, %v1098_v6  ;;  %2757 = vmatmul.msk.f32.gmra.mxu0 %vm262_vm1, %v3798_v32 }
 0x1d2   : > { %2689 = vmatmul.msk.f32.gmra.mxu2 %vm262_vm1, %v3280_v36  ;;  %v3812_v36 = vpop.f32.mrf.mxu0 }
 0x1d3   : > { %2601 = vmatmul.msk.f32.gmra.mxu3 %vm262_vm1, %v3246_v10  ;;  %v3804_v1 = vadd.f32 %v1450_v57, %v1380_v31  ;;  %2670 = vmatmul.msk.f32.gmra.mxu1 %vm262_vm1, %v3534_v34  ;;  %v3817_v57 = vld [vmem:[#allocation2 + $0x82] sm:$0xff] }
 0x1d4   : > { %v4569_v31 = vld [vmem:[#allocation18_spill] sm:$0xff] }
 0x1d5   : > { %v3810_v50 = vpop.f32.mrf.mxu2  ;;  %v895_v9 = vadd.f32 %v4570_v19, %v4569_v31  ;;  %v4573_v31 = vld [vmem:[#allocation22_spill] sm:$0xff]  ;;  %v4574_v19 = vld [vmem:[#allocation20_spill] sm:$0xff] }
 0x1d6   : > { %4567 = vst [vmem:[#allocation8_spill] sm:$0xff] %v3810_v50  ;;  %v1015_v16 = vpop.f32.mrf.mxu3 }
 0x1d7   : > { %v1099_v30 = vadd.f32 %v1015_v16, %v892_v56 }
 0x1d8   : > { %v1459_v10 = vpop.f32.mrf.mxu1 }
 0x1d9   : > { %v1381_v6 = vadd.f32 %v4568_v21, %v1099_v30  ;;  %2758 = vmatmul.msk.f32.gmra.mxu0 %vm262_vm1, %v3817_v57  ;;  %v4572_v21 = vld [vmem:[#allocation15_spill] sm:$0xff] }
 0x1da   : > { %2690 = vmatmul.msk.f32.gmra.mxu2 %vm262_vm1, %v3298_v49  ;;  %v3831_v30 = vpop.f32.mrf.mxu0 }
 0x1db   : > { %2602 = vmatmul.msk.f32.gmra.mxu3 %vm262_vm1, %v3264_v24  ;;  %v3823_v61 = vadd.f32 %v1453_v60, %v1381_v6  ;;  %2671 = vmatmul.msk.f32.gmra.mxu1 %vm262_vm1, %v3552_v44  ;;  %v3836_v60 = vld [vmem:[#allocation2 + $0x92] sm:$0xff] }
 0x1dd   : > { %v3829_v56 = vpop.f32.mrf.mxu2 }
 0x1de   : > { %4571 = vst [vmem:[#allocation14_spill] sm:$0xff] %v3829_v56  ;;  %v1018_v16 = vpop.f32.mrf.mxu3 }
 0x1df   : > { %v1100_v49 = vadd.f32 %v1018_v16, %v895_v9  ;;  %v898_v9 = vadd.f32 %v4574_v19, %v4573_v31  ;;  %v4579_v31 = vld [vmem:[#allocation26_spill] sm:$0xff]  ;;  %v4580_v19 = vld [vmem:[#allocation23_spill] sm:$0xff] }
 0x1e0   : > { %v1462_v24 = vpop.f32.mrf.mxu1 }
 0x1e1   : > { %v1382_v50 = vadd.f32 %v4572_v21, %v1100_v49  ;;  %2759 = vmatmul.msk.f32.gmra.mxu0 %vm262_vm1, %v3836_v60  ;;  %v4576_v21 = vld [vmem:[#allocation19_spill] sm:$0xff] }
 0x1e2   : > { %2691 = vmatmul.msk.f32.gmra.mxu2 %vm262_vm1, %v3316_v2 }
 0x1e3   : > { %2603 = vmatmul.msk.f32.gmra.mxu3 %vm262_vm1, %v3282_v37  ;;  %v3842_v6 = vadd.f32 %v1456_v62, %v1382_v50  ;;  %2672 = vmatmul.msk.f32.gmra.mxu1 %vm262_vm1, %v3570_v25  ;;  %v3853_v37 = vld [vmem:[#allocation2 + $0x9a] sm:$0xff]  ;;  %v3855_v62 = vpop.f32.mrf.mxu0 }
 0x1e4   : > { %4577 = vst [vmem:[#allocation11_spill] sm:$0xff] %v3855_v62 }
 0x1e5   : > { %v3848_v16 = vpop.f32.mrf.mxu2 }
 0x1e6   : > { %4575 = vst [vmem:[#allocation12_spill] sm:$0xff] %v3848_v16  ;;  %v1021_v49 = vpop.f32.mrf.mxu3 }
 0x1e7   : > { %v1101_v2 = vadd.f32 %v1021_v49, %v898_v9  ;;  %v901_v9 = vadd.f32 %v4580_v19, %v4579_v31  ;;  %v4585_v31 = vld [vmem:[#allocation27_spill] sm:$0xff] }
 0x1e8   : > { %v1465_v8 = vpop.f32.mrf.mxu1 }
 0x1e9   : > { %v1383_v56 = vadd.f32 %v4576_v21, %v1101_v2  ;;  %2760 = vmatmul.msk.f32.gmra.mxu0 %vm262_vm1, %v3853_v37  ;;  %v4582_v21 = vld [vmem:[#allocation25_spill] sm:$0xff] }
 0x1ea   : > { %2692 = vmatmul.msk.f32.gmra.mxu2 %vm262_vm1, %v3342_v28 }
 0x1eb   : > { %2604 = vmatmul.msk.f32.gmra.mxu3 %vm262_vm1, %v3300_v52  ;;  %v3861_v50 = vadd.f32 %v1459_v10, %v1383_v56  ;;  %2673 = vmatmul.msk.f32.gmra.mxu1 %vm262_vm1, %v3586_v12  ;;  %v3872_v52 = vld [vmem:[#allocation2 + $0xaa] sm:$0xff] }
 0x1ec   : > { %v4584_v56 = vld [vmem:[#allocation30_spill] sm:$0xff] }
 0x1ed   : > { %4578 = vst [vmem:[#allocation18_spill] sm:$0xff] %v3861_v50  ;;  %v3867_v49 = vpop.f32.mrf.mxu2  ;;  %v904_v19 = vadd.f32 %v4585_v31, %v4584_v56  ;;  %v4589_v56 = vld [vmem:[#allocation33_spill] sm:$0xff]  ;;  %v4590_v31 = vld [vmem:[#allocation31_spill] sm:$0xff] }
 0x1ee   : > { %4581 = vst [vmem:[#allocation16_spill] sm:$0xff] %v3867_v49  ;;  %v1024_v28 = vpop.f32.mrf.mxu3 }
 0x1ef   : > { %v1102_v2 = vadd.f32 %v1024_v28, %v901_v9  ;;  %v3884_v9 = vpop.f32.mrf.mxu0 }
 0x1f0   : > { %v1468_v62 = vpop.f32.mrf.mxu1 }
 0x1f1   : > { %v1384_v16 = vadd.f32 %v4582_v21, %v1102_v2  ;;  %2761 = vmatmul.msk.f32.gmra.mxu0 %vm262_vm1, %v3872_v52  ;;  %v4587_v21 = vld [vmem:[#allocation29_spill] sm:$0xff] }
 0x1f2   : > { %2693 = vmatmul.msk.f32.gmra.mxu2 %vm262_vm1, %v3369_v48 }
 0x1f3   : > { %2605 = vmatmul.msk.f32.gmra.mxu3 %vm262_vm1, %v3321_v5  ;;  %v3878_v10 = vadd.f32 %v1462_v24, %v1384_v16  ;;  %2674 = vmatmul.msk.f32.gmra.mxu1 %vm262_vm1, %v3604_v43  ;;  %v3891_v24 = vld [vmem:[#allocation2 + $0xb2] sm:$0xff] }
 0x1f5   : > { %4583 = vst [vmem:[#allocation15_spill] sm:$0xff] %v3878_v10  ;;  %v3886_v28 = vpop.f32.mrf.mxu2  ;;  %v4592_v10 = vld [vmem:[#allocation34_spill] sm:$0xff] }
 0x1f6   : > { %4586 = vst [vmem:[#allocation22_spill] sm:$0xff] %v3886_v28  ;;  %v1027_v48 = vpop.f32.mrf.mxu3 }
 0x1f7   : > { %v1103_v2 = vadd.f32 %v1027_v48, %v904_v19  ;;  %v907_v19 = vadd.f32 %v4590_v31, %v4589_v56  ;;  %v4596_v31 = vld [vmem:[#allocation37_spill] sm:$0xff] }
 0x1f8   : > { %v1471_v5 = vpop.f32.mrf.mxu1 }
 0x1f9   : > { %v1385_v50 = vadd.f32 %v4587_v21, %v1103_v2  ;;  %2762 = vmatmul.msk.f32.gmra.mxu0 %vm262_vm1, %v3891_v24 }
 0x1fa   : > { %2694 = vmatmul.msk.f32.gmra.mxu2 %vm262_vm1, %v3388_v58  ;;  %v3905_v58 = vpop.f32.mrf.mxu0 }
 0x1fb   : > { %2606 = vmatmul.msk.f32.gmra.mxu3 %vm262_vm1, %v3344_v29  ;;  %v3897_v16 = vadd.f32 %v1465_v8, %v1385_v50  ;;  %2675 = vmatmul.msk.f32.gmra.mxu1 %vm262_vm1, %v3622_v0  ;;  %v3910_v8 = vld [vmem:[#allocation2 + $0xc2] sm:$0xff]  ;;  %v4594_v50 = vld [vmem:[#allocation3_spill] sm:$0xff] }
 0x1fc   : > { %4593 = vst [vmem:[#allocation26_spill] sm:$0xff] %v3910_v8 }
 0x1fd   : > { %4588 = vst [vmem:[#allocation20_spill] sm:$0xff] %v3897_v16  ;;  %v3903_v48 = vpop.f32.mrf.mxu2 }
 0x1fe   : > { %4591 = vst [vmem:[#allocation19_spill] sm:$0xff] %v3903_v48  ;;  %v1030_v2 = vpop.f32.mrf.mxu3  ;;  %v4600_v48 = vld [vmem:[#allocation38_spill] sm:$0xff] }
 0x1ff   : > { %v1104_v21 = vadd.f32 %v1030_v2, %v907_v19  ;;  %v4597_v19 = vld [vmem:[#allocation35_spill] sm:$0xff] }
 0x200   : > { %v1474_v29 = vpop.f32.mrf.mxu1 }
 0x201   : > { %v1386_v28 = vadd.f32 %v4592_v10, %v1104_v21  ;;  %2763 = vmatmul.msk.f32.gmra.mxu0 %vm262_vm1, %v3910_v8  ;;  %v910_v10 = vadd.f32 %v4597_v19, %v4596_v31  ;;  %v3935_v31 = vld [vmem:[#allocation2 + $0x181] sm:$0xff]  ;;  %v4607_v8 = vld [vmem:[#allocation44_spill] sm:$0xff] }
 0x202   : > { %2695 = vmatmul.msk.f32.gmra.mxu2 %vm262_vm1, %v3410_v17  ;;  %v3924_v16 = vpop.f32.mrf.mxu0 }
 0x203   : > { %2607 = vmatmul.msk.f32.gmra.mxu3 %vm262_vm1, %v4594_v50  ;;  %v3916_v56 = vadd.f32 %v1468_v62, %v1386_v28  ;;  %2676 = vmatmul.msk.f32.gmra.mxu1 %vm262_vm1, %v3640_v55  ;;  %4599 = vst [vmem:[#allocation30_spill] sm:$0xff] %v3924_v16  ;;  %v3929_v62 = vld [vmem:[#allocation2 + $0xca] sm:$0xff]  ;;  %v4602_v28 = vld [vmem:[#allocation4_spill] sm:$0xff] }
 0x204   : > { %4601 = vst [vmem:[#allocation27_spill] sm:$0xff] %v3929_v62 }
 0x205   : > { %4595 = vst [vmem:[#allocation23_spill] sm:$0xff] %v3916_v56  ;;  %v3922_v2 = vpop.f32.mrf.mxu2 }
 0x206   : > { %4598 = vst [vmem:[#allocation25_spill] sm:$0xff] %v3922_v2  ;;  %v1033_v21 = vpop.f32.mrf.mxu3  ;;  %v630_v2 = vld [vmem:[#allocation2 + $0x198] sm:$0xff] }
 0x207   : > { %v1105_v17 = vadd.f32 %v1033_v21, %v910_v10  ;;  %v4605_v10 = vld [vmem:[#allocation39_spill] sm:$0xff] }
 0x208   : > { %v1477_v50 = vpop.f32.mrf.mxu1 }
 0x209   : > { %v1387_v49 = vadd.f32 %v4600_v48, %v1105_v17  ;;  %2764 = vmatmul.msk.f32.gmra.mxu0 %vm262_vm1, %v3929_v62  ;;  %v4604_v48 = vld [vmem:[#allocation41_spill] sm:$0xff] }
 0x20a   : > { %2696 = vmatmul.msk.f32.gmra.mxu2 %vm262_vm1, %v3428_v26  ;;  %v913_v21 = vadd.f32 %v4605_v10, %v4604_v48  ;;  %v3948_v62 = vld [vmem:[#allocation2 + $0xda] sm:$0xff] }
 0x20b   : > { %2608 = vmatmul.msk.f32.gmra.mxu3 %vm262_vm1, %v4602_v28  ;;  %v3937_v19 = vadd.f32 %v1471_v5, %v1387_v49  ;;  %2677 = vmatmul.msk.f32.gmra.mxu1 %vm262_vm1, %v3935_v31  ;;  %4608 = vst [vmem:[#allocation31_spill] sm:$0xff] %v3948_v62  ;;  %v3950_v49 = vpop.f32.mrf.mxu0  ;;  %v3955_v5 = vld [vmem:[#allocation2 + $0x189] sm:$0xff] }
 0x20d   : > { %4603 = vst [vmem:[#allocation29_spill] sm:$0xff] %v3937_v19  ;;  %v3943_v17 = vpop.f32.mrf.mxu2 }
 0x20e   : > { %4606 = vst [vmem:[#allocation33_spill] sm:$0xff] %v3943_v17  ;;  %v1036_v26 = vpop.f32.mrf.mxu3 }
 0x20f   : > { %v1106_v56 = vadd.f32 %v1036_v26, %v913_v21 }
 0x210   : > { %v1480_v16 = vpop.f32.mrf.mxu1 }
 0x211   : > { %v1388_v28 = vadd.f32 %v4607_v8, %v1106_v56  ;;  %2765 = vmatmul.msk.f32.gmra.mxu0 %vm262_vm1, %v3948_v62  ;;  %v4610_v8 = vld [vmem:[#allocation45_spill] sm:$0xff]  ;;  %v4611_v56 = vld [vmem:[#allocation42_spill] sm:$0xff] }
 0x212   : > { %2697 = vmatmul.msk.f32.gmra.mxu2 %vm262_vm1, %v3446_v39  ;;  %v916_v10 = vadd.f32 %v4611_v56, %v4610_v8  ;;  %v4615_v8 = vld [vmem:[#allocation46_spill] sm:$0xff] }
 0x213   : > { %2609 = vmatmul.msk.f32.gmra.mxu3 %vm262_vm1, %v630_v2  ;;  %v3957_v48 = vadd.f32 %v1474_v29, %v1388_v28  ;;  %2678 = vmatmul.msk.f32.gmra.mxu1 %vm262_vm1, %v3955_v5  ;;  %v631_v2 = vld [vmem:[#allocation2 + $0x1a0] sm:$0xff] }
 0x214   : > { %v3969_v29 = vld [vmem:[#allocation2 + $0xe2] sm:$0xff] }
 0x215   : > { %4609 = vst [vmem:[#allocation34_spill] sm:$0xff] %v3957_v48  ;;  %v1591_v39 = vpop.f32.mrf.mxu2 }
 0x216   : > { %v1039_v21 = vpop.f32.mrf.mxu3  ;;  %v3964_v26 = vadd.f32 %v1591_v39, %v3711_v38  ;;  %v4614_v38 = vld [vmem:[#allocation48_spill] sm:$0xff] }
 0x217   : > { %v1107_v19 = vadd.f32 %v1039_v21, %v916_v10  ;;  %v919_v56 = vadd.f32 %v4615_v8, %v4614_v38  ;;  %v1719_v21 = vld [vmem:[#allocation2 + $0x2] sm:$0xff] }
 0x218   : > { %4612 = vst [vmem:[#allocation3_spill] sm:$0xff] %v3964_v26  ;;  %v1483_v62 = vpop.f32.mrf.mxu1  ;;  %v4618_v38 = vld [vmem:[#allocation50_spill] sm:$0xff] }
 0x219   : > { %v1389_v17 = vadd.f32 %v3652_v11, %v1107_v19  ;;  %2766 = vmatmul.msk.f32.gmra.mxu0 %vm262_vm1, %v3969_v29  ;;  %v3980_v11 = vpop.f32.mrf.mxu0 }
 0x21a   : > { %2698 = vmatmul.msk.f32.gmra.mxu2 %vm262_vm1, %v3464_v7 }
 0x21b   : > { %2610 = vmatmul.msk.f32.gmra.mxu3 %vm262_vm1, %v631_v2  ;;  %v3974_v28 = vadd.f32 %v1477_v50, %v1389_v17  ;;  %2783 = vmatmul.msk.f32.vlgmr.msra.gmra.mxu1 %vm262_vm1, %v3688_v22  ;;  %v4616_v2 = vld [vmem:[#allocation53_spill] sm:$0xff]  ;;  %v3988_v50 = vld [vmem:[#allocation2 + $0xf2] sm:$0xff] }
 0x21d   : > { %4613 = vst [vmem:[#allocation37_spill] sm:$0xff] %v3974_v28  ;;  %v1594_v19 = vpop.f32.mrf.mxu2 }
 0x21e   : > { %v1042_v10 = vpop.f32.mrf.mxu3  ;;  %v3983_v7 = vadd.f32 %v1594_v19, %v3730_v3  ;;  %v4617_v3 = vld [vmem:[#allocation5_spill] sm:$0xff] }
 0x21f   : > { %v1108_v39 = vadd.f32 %v1042_v10, %v919_v56  ;;  %v922_v8 = vadd.f32 %v4618_v38, %v4617_v3  ;;  %v4620_v3 = vld [vmem:[#allocation54_spill] sm:$0xff] }
 0x220   : > { %v1486_v26 = vpop.f32.mrf.mxu1 }
 0x221   : > { %v1390_v48 = vadd.f32 %v4616_v2, %v1108_v39  ;;  %2767 = vmatmul.msk.f32.gmra.mxu0 %vm262_vm1, %v3988_v50 }
 0x222   : > { %2699 = vmatmul.msk.f32.gmra.mxu2 %vm262_vm1, %v3482_v54  ;;  %v4002_v54 = vpop.f32.mrf.mxu0 }
 0x223   : > { %2715 = vmatmul.msk.f32.vlgmr.msra.gmra.mxu3 %vm262_vm1, %v1719_v21  ;;  %v3993_v17 = vadd.f32 %v1480_v16, %v1390_v48  ;;  %2784 = vmatmul.msk.f32.gmra.mxu1 %vm262_vm1, %v3705_v14  ;;  %v1720_v21 = vld [vmem:[#allocation2 + $0xa] sm:$0xff]  ;;  %v4007_v16 = vld [vmem:[#allocation2 + $0xfa] sm:$0xff] }
 0x225   : > { %v1597_v56 = vpop.f32.mrf.mxu2 }
 0x226   : > { %v1045_v19 = vpop.f32.mrf.mxu3  ;;  %v4000_v10 = vadd.f32 %v1597_v56, %v3749_v18  ;;  %v4619_v18 = vld [vmem:[#allocation6_spill] sm:$0xff] }
 0x227   : > { %v1109_v39 = vadd.f32 %v1045_v19, %v922_v8  ;;  %v925_v38 = vadd.f32 %v4620_v3, %v4619_v18 }
 0x228   : > { %v1489_v28 = vpop.f32.mrf.mxu1 }
 0x229   : > { %v1391_v2 = vadd.f32 %v3698_v13, %v1109_v39  ;;  %2768 = vmatmul.msk.f32.gmra.mxu0 %vm262_vm1, %v4007_v16 }
 0x22a   : > { %2700 = vmatmul.msk.f32.gmra.mxu2 %vm262_vm1, %v3498_v45  ;;  %v4021_v19 = vpop.f32.mrf.mxu0 }
 0x22b   : > { %2716 = vmatmul.msk.f32.gmra.mxu3 %vm262_vm1, %v1720_v21  ;;  %v4012_v48 = vadd.f32 %v1483_v62, %v1391_v2  ;;  %2785 = vmatmul.msk.f32.gmra.mxu1 %vm262_vm1, %v3724_v33  ;;  %v4026_v62 = vld [vmem:[#allocation2 + $0x10a] sm:$0xff]  ;;  %v4621_v2 = vld [vmem:[#allocation49_spill] sm:$0xff] }
 0x22d   : > { %v1600_v13 = vpop.f32.mrf.mxu2 }
 0x22e   : > { %v1048_v8 = vpop.f32.mrf.mxu3  ;;  %v4019_v56 = vadd.f32 %v1600_v13, %v3768_v4  ;;  %v4622_v4 = vld [vmem:[#allocation7_spill] sm:$0xff] }
 0x22f   : > { %v1110_v45 = vadd.f32 %v1048_v8, %v925_v38 }
 0x230   : > { %v1492_v21 = vpop.f32.mrf.mxu1 }
 0x231   : > { %v1392_v39 = vadd.f32 %v3719_v41, %v1110_v45  ;;  %2769 = vmatmul.msk.f32.gmra.mxu0 %vm262_vm1, %v4026_v62  ;;  %v928_v41 = vadd.f32 %v3700_v40, %v4622_v4 }
 0x232   : > { %2701 = vmatmul.msk.f32.gmra.mxu2 %vm262_vm1, %v3516_v59 }
 0x233   : > { %2717 = vmatmul.msk.f32.gmra.mxu3 %vm262_vm1, %v4621_v2  ;;  %v4032_v18 = vadd.f32 %v1486_v26, %v1392_v39  ;;  %2786 = vmatmul.msk.f32.gmra.mxu1 %vm262_vm1, %v3743_v53  ;;  %v4044_v26 = vld [vmem:[#allocation2 + $0x112] sm:$0xff]  ;;  %v4046_v39 = vpop.f32.mrf.mxu0 }
 0x234   : > { %v4623_v2 = vld [vmem:[#allocation52_spill] sm:$0xff] }
 0x235   : > { %v1603_v3 = vpop.f32.mrf.mxu2 }
 0x236   : > { %v1051_v38 = vpop.f32.mrf.mxu3  ;;  %v4039_v59 = vadd.f32 %v1603_v3, %v3785_v23 }
 0x237   : > { %v1111_v13 = vadd.f32 %v1051_v38, %v928_v41 }
 0x238   : > { %v1495_v45 = vpop.f32.mrf.mxu1 }
 0x239   : > { %v1393_v8 = vadd.f32 %v3738_v46, %v1111_v13  ;;  %2770 = vmatmul.msk.f32.gmra.mxu0 %vm262_vm1, %v4044_v26  ;;  %v4624_v46 = vld [vmem:[#allocation10_spill] sm:$0xff] }
 0x23a   : > { %2702 = vmatmul.msk.f32.gmra.mxu2 %vm262_vm1, %v3534_v34  ;;  %v931_v23 = vadd.f32 %v3717_v63, %v4624_v46 }
 0x23b   : > { %2718 = vmatmul.msk.f32.gmra.mxu3 %vm262_vm1, %v4623_v2  ;;  %v4052_v40 = vadd.f32 %v1489_v28, %v1393_v8  ;;  %2787 = vmatmul.msk.f32.gmra.mxu1 %vm262_vm1, %v3760_v42  ;;  %v4064_v28 = vld [vmem:[#allocation2 + $0x122] sm:$0xff]  ;;  %v4076_v8 = vpop.f32.mrf.mxu0 }
 0x23d   : > { %v1606_v4 = vpop.f32.mrf.mxu2 }
 0x23e   : > { %v1054_v34 = vpop.f32.mrf.mxu3  ;;  %v4059_v41 = vadd.f32 %v1606_v4, %v3804_v1  ;;  %v4625_v1 = vld [vmem:[#allocation13_spill] sm:$0xff] }
 0x23f   : > { %v1112_v3 = vadd.f32 %v1054_v34, %v931_v23 }
 0x240   : > { %v1498_v13 = vpop.f32.mrf.mxu1 }
 0x241   : > { %v1394_v38 = vadd.f32 %v3762_v27, %v1112_v3  ;;  %2771 = vmatmul.msk.f32.gmra.mxu0 %vm262_vm1, %v4064_v28  ;;  %v934_v27 = vadd.f32 %v3736_v15, %v4625_v1 }
 0x242   : > { %2703 = vmatmul.msk.f32.gmra.mxu2 %vm262_vm1, %v3552_v44 }
 0x243   : > { %2719 = vmatmul.msk.f32.gmra.mxu3 %vm262_vm1, %v3688_v22  ;;  %v4070_v63 = vadd.f32 %v1492_v21, %v1394_v38  ;;  %2788 = vmatmul.msk.f32.gmra.mxu1 %vm262_vm1, %v3779_v51  ;;  %v4084_v21 = vld [vmem:[#allocation2 + $0x12a] sm:$0xff]  ;;  %v4099_v38 = vpop.f32.mrf.mxu0 }
 0x245   : > { %v1609_v2 = vpop.f32.mrf.mxu2 }
 0x246   : > { %v1057_v44 = vpop.f32.mrf.mxu3  ;;  %v4079_v46 = vadd.f32 %v1609_v2, %v3823_v61  ;;  %v4626_v61 = vld [vmem:[#allocation17_spill] sm:$0xff] }
 0x247   : > { %v1113_v23 = vadd.f32 %v1057_v44, %v934_v27 }
 0x248   : > { %v1501_v4 = vpop.f32.mrf.mxu1 }
 0x249   : > { %v1395_v22 = vadd.f32 %v3791_v47, %v1113_v23  ;;  %2772 = vmatmul.msk.f32.gmra.mxu0 %vm262_vm1, %v4084_v21  ;;  %v937_v47 = vadd.f32 %v3755_v20, %v4626_v61  ;;  %v4629_v61 = vld [vmem:[#allocation9_spill] sm:$0xff] }
 0x24a   : > { %2704 = vmatmul.msk.f32.gmra.mxu2 %vm262_vm1, %v3570_v25 }
 0x24b   : > { %2720 = vmatmul.msk.f32.gmra.mxu3 %vm262_vm1, %v3705_v14  ;;  %v4090_v15 = vadd.f32 %v1495_v45, %v1395_v22  ;;  %2789 = vmatmul.msk.f32.gmra.mxu1 %vm262_vm1, %v3798_v32  ;;  %v4104_v45 = vld [vmem:[#allocation2 + $0x13a] sm:$0xff]  ;;  %v4116_v23 = vpop.f32.mrf.mxu0 }
 0x24d   : > { %v1612_v34 = vpop.f32.mrf.mxu2 }
 0x24e   : > { %v1060_v3 = vpop.f32.mrf.mxu3  ;;  %v4097_v25 = vadd.f32 %v1612_v34, %v3842_v6  ;;  %v4627_v6 = vld [vmem:[#allocation21_spill] sm:$0xff] }
 0x24f   : > { %v1114_v1 = vadd.f32 %v1060_v3, %v937_v47  ;;  %v4630_v3 = vld [vmem:[#allocation11_spill] sm:$0xff] }
 0x250   : > { %v1504_v27 = vpop.f32.mrf.mxu1 }
 0x251   : > { %v1396_v14 = vadd.f32 %v3812_v36, %v1114_v1  ;;  %2773 = vmatmul.msk.f32.gmra.mxu0 %vm262_vm1, %v4104_v45  ;;  %v940_v36 = vadd.f32 %v3774_v35, %v4627_v6  ;;  %v4628_v35 = vld [vmem:[#allocation24_spill] sm:$0xff] }
 0x252   : > { %2705 = vmatmul.msk.f32.gmra.mxu2 %vm262_vm1, %v3586_v12  ;;  %v4631_v6 = vld [vmem:[#allocation28_spill] sm:$0xff] }
 0x253   : > { %2721 = vmatmul.msk.f32.gmra.mxu3 %vm262_vm1, %v3724_v33  ;;  %v4110_v20 = vadd.f32 %v1498_v13, %v1396_v14  ;;  %2790 = vmatmul.msk.f32.gmra.mxu1 %vm262_vm1, %v3817_v57  ;;  %v4121_v33 = vld [vmem:[#allocation2 + $0x142] sm:$0xff]  ;;  %v4138_v14 = vpop.f32.mrf.mxu0 }
 0x256   : > { %v1063_v2 = vpop.f32.mrf.mxu3 }
 0x257   : > { %v1115_v44 = vadd.f32 %v1063_v2, %v940_v36  ;;  %v4632_v36 = vld [vmem:[#allocation8_spill] sm:$0xff] }
 0x258   : > { %v1507_v22 = vpop.f32.mrf.mxu1  ;;  %v946_v2 = vadd.f32 %v4632_v36, %v4631_v6  ;;  %v4635_v6 = vld [vmem:[#allocation36_spill] sm:$0xff] }
 0x259   : > { %v1397_v12 = vadd.f32 %v3831_v30, %v1115_v44  ;;  %2774 = vmatmul.msk.f32.gmra.mxu0 %vm262_vm1, %v4121_v33  ;;  %v943_v30 = vadd.f32 %v4629_v61, %v4628_v35  ;;  %v4633_v61 = vld [vmem:[#allocation32_spill] sm:$0xff] }
 0x25a   : > { %2706 = vmatmul.msk.f32.gmra.mxu2 %vm262_vm1, %v3604_v43  ;;  %v4636_v36 = vld [vmem:[#allocation12_spill] sm:$0xff] }
 0x25b   : > { %2722 = vmatmul.msk.f32.gmra.mxu3 %vm262_vm1, %v3743_v53  ;;  %v4127_v13 = vadd.f32 %v1501_v4, %v1397_v12  ;;  %2791 = vmatmul.msk.f32.gmra.mxu1 %vm262_vm1, %v3836_v60  ;;  %v4136_v53 = vld [vmem:[#allocation2 + $0x152] sm:$0xff] }
 0x25e   : > { %v1066_v47 = vpop.f32.mrf.mxu3 }
 0x25f   : > { %v1116_v34 = vadd.f32 %v1066_v47, %v943_v30  ;;  %v4634_v30 = vld [vmem:[#allocation14_spill] sm:$0xff]  ;;  %v4165_v47 = vpop.f32.mrf.mxu0 }
 0x260   : > { %v1510_v1 = vpop.f32.mrf.mxu1 }
 0x261   : > { %v1398_v43 = vadd.f32 %v4630_v3, %v1116_v34  ;;  %2775 = vmatmul.msk.f32.gmra.mxu0 %vm262_vm1, %v4136_v53 }
 0x262   : > { %2707 = vmatmul.msk.f32.gmra.mxu2 %vm262_vm1, %v3622_v0 }
 0x263   : > { %2723 = vmatmul.msk.f32.gmra.mxu3 %vm262_vm1, %v3760_v42  ;;  %v4144_v4 = vadd.f32 %v1504_v27, %v1398_v43  ;;  %2792 = vmatmul.msk.f32.gmra.mxu1 %vm262_vm1, %v3853_v37  ;;  %v4153_v42 = vld [vmem:[#allocation2 + $0x15a] sm:$0xff] }
 0x266   : > { %v1069_v44 = vpop.f32.mrf.mxu3 }
 0x267   : > { %v1117_v0 = vadd.f32 %v1069_v44, %v946_v2  ;;  %v4182_v44 = vpop.f32.mrf.mxu0 }
 0x268   : > { %v1513_v35 = vpop.f32.mrf.mxu1 }
 0x269   : > { %v1399_v12 = vadd.f32 %v3884_v9, %v1117_v0  ;;  %2776 = vmatmul.msk.f32.gmra.mxu0 %vm262_vm1, %v4153_v42  ;;  %v949_v9 = vadd.f32 %v4634_v30, %v4633_v61  ;;  %v4637_v0 = vld [vmem:[#allocation30_spill] sm:$0xff] }
 0x26a   : > { %2708 = vmatmul.msk.f32.gmra.mxu2 %vm262_vm1, %v3640_v55  ;;  %v4639_v30 = vld [vmem:[#allocation26_spill] sm:$0xff] }
 0x26b   : > { %2724 = vmatmul.msk.f32.gmra.mxu3 %vm262_vm1, %v3779_v51  ;;  %v4159_v27 = vadd.f32 %v1507_v22, %v1399_v12  ;;  %2793 = vmatmul.msk.f32.gmra.mxu1 %vm262_vm1, %v3872_v52  ;;  %v4170_v51 = vld [vmem:[#allocation2 + $0x16a] sm:$0xff] }
 0x26e   : > { %v1072_v34 = vpop.f32.mrf.mxu3 }
 0x26f   : > { %v1118_v55 = vadd.f32 %v1072_v34, %v949_v9  ;;  %v4640_v9 = vld [vmem:[#allocation40_spill] sm:$0xff] }
 0x270   : > { %v1516_v43 = vpop.f32.mrf.mxu1  ;;  %v4641_v34 = vld [vmem:[#allocation16_spill] sm:$0xff] }
 0x271   : > { %v1400_v3 = vadd.f32 %v3905_v58, %v1118_v55  ;;  %2777 = vmatmul.msk.f32.gmra.mxu0 %vm262_vm1, %v4170_v51  ;;  %v952_v58 = vadd.f32 %v4636_v36, %v4635_v6  ;;  %v955_v55 = vadd.f32 %v4641_v34, %v4640_v9  ;;  %v1159_v36 = vld [vmem:[#allocation2 + $0x199] sm:$0xff] }
 0x272   : > { %2709 = vmatmul.msk.f32.gmra.mxu2 %vm262_vm1, %v3935_v31 }
 0x273   : > { %2725 = vmatmul.msk.f32.gmra.mxu3 %vm262_vm1, %v3798_v32  ;;  %v4176_v22 = vadd.f32 %v1510_v1, %v1400_v3  ;;  %2794 = vmatmul.msk.f32.gmra.mxu1 %vm262_vm1, %v3891_v24  ;;  %v4187_v32 = vld [vmem:[#allocation2 + $0x172] sm:$0xff] }
 0x276   : > { %v1075_v2 = vpop.f32.mrf.mxu3 }
 0x277   : > { %v1119_v31 = vadd.f32 %v1075_v2, %v952_v58 }
 0x278   : > { %v1519_v61 = vpop.f32.mrf.mxu1 }
 0x279   : > { %v1401_v12 = vadd.f32 %v4637_v0, %v1119_v31  ;;  %2778 = vmatmul.msk.f32.gmra.mxu0 %vm262_vm1, %v4187_v32  ;;  %v4643_v31 = vld [vmem:[#allocation27_spill] sm:$0xff] }
 0x27a   : > { %2710 = vmatmul.msk.f32.gmra.mxu2 %vm262_vm1, %v3955_v5  ;;  %v4199_v5 = vpop.f32.mrf.mxu0  ;;  %v4644_v0 = vld [vmem:[#allocation43_spill] sm:$0xff] }
 0x27b   : > { %2726 = vmatmul.msk.f32.gmra.mxu3 %vm262_vm1, %v3817_v57  ;;  %v4193_v1 = vadd.f32 %v1513_v35, %v1401_v12  ;;  %2795 = vmatmul.msk.f32.gmra.mxu1 %vm262_vm1, %v4639_v30  ;;  %v4203_v57 = vld [vmem:[#allocation2 + $0x182] sm:$0xff] }
 0x27c   : > { %v4645_v12 = vld [vmem:[#allocation22_spill] sm:$0xff] }
 0x27d   : > { %4638 = vst [vmem:[#allocation35_spill] sm:$0xff] %v4193_v1  ;;  %v958_v9 = vadd.f32 %v4645_v12, %v4644_v0  ;;  %v4648_v0 = vld [vmem:[#allocation47_spill] sm:$0xff] }
 0x27e   : > { %v1078_v3 = vpop.f32.mrf.mxu3 }
 0x27f   : > { %v1120_v6 = vadd.f32 %v1078_v3, %v955_v55  ;;  %v1160_v55 = vld [vmem:[#allocation2 + $0x1a1] sm:$0xff] }
 0x280   : > { %v1522_v2 = vpop.f32.mrf.mxu1 }
 0x281   : > { %v1402_v58 = vadd.f32 %v3950_v49, %v1120_v6  ;;  %2779 = vmatmul.msk.f32.gmra.mxu0 %vm262_vm1, %v4203_v57 }
 0x282   : > { %2711 = vmatmul.msk.f32.gmra.mxu2 %vm262_vm1, %v1159_v36  ;;  %v4219_v36 = vpop.f32.mrf.mxu0 }
 0x283   : > { %2727 = vmatmul.msk.f32.gmra.mxu3 %vm262_vm1, %v3836_v60  ;;  %v4209_v35 = vadd.f32 %v1516_v43, %v1402_v58  ;;  %2796 = vmatmul.msk.f32.gmra.mxu1 %vm262_vm1, %v4643_v31  ;;  %v4217_v60 = vld [vmem:[#allocation2 + $0x18a] sm:$0xff] }
 0x284   : > { %v4647_v58 = vld [vmem:[#allocation31_spill] sm:$0xff] }
 0x285   : > { %4642 = vst [vmem:[#allocation38_spill] sm:$0xff] %v4209_v35 }
 0x286   : > { %v1081_v49 = vpop.f32.mrf.mxu3 }
 0x287   : > { %v1121_v34 = vadd.f32 %v1081_v49, %v958_v9 }
 0x288   : > { %v1525_v6 = vpop.f32.mrf.mxu1 }
 0x289   : > { %v1403_v3 = vadd.f32 %v3980_v11, %v1121_v34  ;;  %2780 = vmatmul.msk.f32.gmra.mxu0 %vm262_vm1, %v4217_v60  ;;  %v4649_v11 = vld [vmem:[#allocation19_spill] sm:$0xff] }
 0x28a   : > { %2712 = vmatmul.msk.f32.gmra.mxu2 %vm262_vm1, %v1160_v55  ;;  %v961_v12 = vadd.f32 %v4649_v11, %v4648_v0 }
 0x28b   : > { %2728 = vmatmul.msk.f32.gmra.mxu3 %vm262_vm1, %v3853_v37  ;;  %v4225_v43 = vadd.f32 %v1519_v61, %v1403_v3  ;;  %2797 = vmatmul.msk.f32.gmra.mxu1 %vm262_vm1, %v4647_v58  ;;  %v4650_v61 = vld [vmem:[#allocation51_spill] sm:$0xff]  ;;  %v4651_v3 = vld [vmem:[#allocation25_spill] sm:$0xff] }
 0x28d   : > { %4646 = vst [vmem:[#allocation4_spill] sm:$0xff] %v4225_v43  ;;  %v964_v43 = vadd.f32 %v4651_v3, %v4650_v61  ;;  %v4261_v61 = vld [vmem:[%s4497_s4] ss:$0 sm:$0xff] }
 0x28e   : > { %v1084_v9 = vpop.f32.mrf.mxu3 }
 0x28f   : > { %v1122_v49 = vadd.f32 %v1084_v9, %v961_v12 }
 0x290   : > { %v1528_v55 = vpop.f32.mrf.mxu1 }
 0x291   : > { %v1404_v34 = vadd.f32 %v4002_v54, %v1122_v49 }
 0x293   : > { %2729 = vmatmul.msk.f32.gmra.mxu3 %vm262_vm1, %v3872_v52  ;;  %v4234_v37 = vadd.f32 %v1522_v2, %v1404_v34  ;;  %2798 = vmatmul.msk.f32.gmra.mxu1 %vm262_vm1, %v3969_v29  ;;  %v4652_v52 = vld [vmem:[#allocation55_spill] sm:$0xff]  ;;  %v4653_v2 = vld [vmem:[#allocation33_spill] sm:$0xff] }
 0x294   : > { %v967_v12 = vadd.f32 %v4653_v2, %v4652_v52  ;;  %v4281_v2 = vpop.f32.mrf.mxu2 }
 0x296   : > { %v1087_v35 = vpop.f32.mrf.mxu3 }
 0x297   : > { %v1123_v1 = vadd.f32 %v1087_v35, %v964_v43 }
 0x298   : > { %v2185_v11 = vpop.f32.mrf.mxu1 }
 0x299   : > { %v1405_v0 = vadd.f32 %v4021_v19, %v1123_v1  ;;  %v4654_v1 = vld [vmem:[#allocation3_spill] sm:$0xff] }
 0x29b   : > { %2730 = vmatmul.msk.f32.gmra.mxu3 %vm262_vm1, %v3891_v24  ;;  %v4243_v54 = vadd.f32 %v1525_v6, %v1405_v0  ;;  %2799 = vmatmul.msk.f32.gmra.mxu1 %vm262_vm1, %v3988_v50 }
 0x29e   : > { %v1090_v9 = vpop.f32.mrf.mxu3 }
 0x29f   : > { %v1124_v49 = vadd.f32 %v1090_v9, %v967_v12 }
 0x2a0   : > { %v2188_v35 = vpop.f32.mrf.mxu1 }
 0x2a1   : > { %v1406_v34 = vadd.f32 %v4046_v39, %v1124_v49 }
 0x2a3   : > { %2731 = vmatmul.msk.f32.gmra.mxu3 %vm262_vm1, %v4639_v30  ;;  %v4252_v19 = vadd.f32 %v1528_v55, %v1406_v34  ;;  %2800 = vmatmul.msk.f32.gmra.mxu1 %vm262_vm1, %v4007_v16  ;;  %v4287_v34 = vpop.f32.mrf.mxu0 }
 0x2a6   : > { %v1873_v24 = vpop.f32.mrf.mxu3 }
 0x2a7   : > { %v1969_v6 = vadd.f32 %v1873_v24, %v4654_v1  ;;  %v4297_v1 = vpop.f32.mrf.mxu2 }
 0x2a8   : > { %v2191_v39 = vpop.f32.mrf.mxu1 }
 0x2a9   : > { %v2125_v43 = vadd.f32 %v4076_v8, %v1969_v6 }
 0x2ab   : > { %v2281_v3 = vadd.f32 %v2185_v11, %v2125_v43  ;;  %2732 = vmatmul.msk.f32.gmra.mxu3 %vm262_vm1, %v4643_v31  ;;  %2801 = vmatmul.msk.f32.gmra.mxu1 %vm262_vm1, %v4026_v62 }
 0x2ad   : > { %v2317_v30 = vadd.f32 %v4261_v61, %v2281_v3  ;;  %v4303_v3 = vpop.f32.mrf.mxu0 }
 0x2ae   : > { %v1876_v8 = vpop.f32.mrf.mxu3 }
 0x2af   : > { %v2349_v55 = vmax.f32 %v2317_v30, 0.0  ;;  %v1970_v0 = vadd.f32 %v1876_v8, %v3983_v7 }
 0x2b0   : > { %v2194_v11 = vpop.f32.mrf.mxu1 }
 0x2b1   : > { %2381 = vst.msk [vmem:[%s4273_s28] sm:$0xff] %vm262_vm1, %v2349_v55  ;;  %v2126_v31 = vadd.f32 %v4099_v38, %v1970_v0  ;;  %v4311_v0 = vpop.f32.mrf.mxu2 }
 0x2b3   : > { %v2282_v52 = vadd.f32 %v2188_v35, %v2126_v31  ;;  %2733 = vmatmul.msk.f32.gmra.mxu3 %vm262_vm1, %v4647_v58  ;;  %2802 = vmatmul.msk.f32.gmra.mxu1 %vm262_vm1, %v4044_v26 }
 0x2b5   : > { %v2318_v12 = vadd.f32 %v4261_v61, %v2282_v52 }
 0x2b6   : > { %v1879_v9 = vpop.f32.mrf.mxu3 }
 0x2b7   : > { %v2350_v49 = vmax.f32 %v2318_v12, 0.0  ;;  %v1971_v7 = vadd.f32 %v1879_v9, %v4000_v10 }
 0x2b8   : > { %v2197_v35 = vpop.f32.mrf.mxu1 }
 0x2b9   : > { %2382 = vst.msk [vmem:[%s4273_s28 + $0x8] sm:$0xff] %vm262_vm1, %v2350_v49  ;;  %v2127_v38 = vadd.f32 %v4116_v23, %v1971_v7  ;;  %v4327_v7 = vpop.f32.mrf.mxu2 }
 0x2bb   : > { %v2283_v58 = vadd.f32 %v2191_v39, %v2127_v38  ;;  %2734 = vmatmul.msk.f32.gmra.mxu3 %vm262_vm1, %v3969_v29  ;;  %2803 = vmatmul.msk.f32.gmra.mxu1 %vm262_vm1, %v4064_v28 }
 0x2bd   : > { %v2319_v24 = vadd.f32 %v4261_v61, %v2283_v58 }
 0x2be   : > { %v1882_v10 = vpop.f32.mrf.mxu3 }
 0x2bf   : > { %v2351_v6 = vmax.f32 %v2319_v24, 0.0  ;;  %v1972_v43 = vadd.f32 %v1882_v10, %v4019_v56 }
 0x2c0   : > { %v2200_v39 = vpop.f32.mrf.mxu1 }
 0x2c1   : > { %2383 = vst.msk [vmem:[%s4273_s28 + $0x10] sm:$0xff] %vm262_vm1, %v2351_v6  ;;  %v2128_v23 = vadd.f32 %v4138_v14, %v1972_v43 }
 0x2c3   : > { %v2284_v29 = vadd.f32 %v2194_v11, %v2128_v23  ;;  %2735 = vmatmul.msk.f32.gmra.mxu3 %vm262_vm1, %v3988_v50  ;;  %2804 = vmatmul.msk.f32.gmra.mxu1 %vm262_vm1, %v4084_v21  ;;  %v4320_v50 = vpop.f32.mrf.mxu0 }
 0x2c5   : > { %v2320_v30 = vadd.f32 %v4261_v61, %v2284_v29 }
 0x2c6   : > { %v1885_v8 = vpop.f32.mrf.mxu3 }
 0x2c7   : > { %v2352_v55 = vmax.f32 %v2320_v30, 0.0  ;;  %v1973_v56 = vadd.f32 %v1885_v8, %v4039_v59  ;;  %v4655_v8 = vld [vmem:[#allocation18_spill] sm:$0xff] }
 0x2c8   : > { %v2203_v31 = vpop.f32.mrf.mxu1 }
 0x2c9   : > { %2384 = vst.msk [vmem:[%s4273_s28 + $0x18] sm:$0xff] %vm262_vm1, %v2352_v55  ;;  %v2129_v14 = vadd.f32 %v4165_v47, %v1973_v56  ;;  %v1695_v55 = vadd.f32 %v4281_v2, %v4655_v8  ;;  %v4656_v2 = vld [vmem:[#allocation15_spill] sm:$0xff] }
 0x2cb   : > { %v2285_v11 = vadd.f32 %v2197_v35, %v2129_v14  ;;  %2736 = vmatmul.msk.f32.gmra.mxu3 %vm262_vm1, %v4007_v16  ;;  %2805 = vmatmul.msk.f32.gmra.mxu1 %vm262_vm1, %v4104_v45  ;;  %v4334_v58 = vpop.f32.mrf.mxu0 }
 0x2cd   : > { %v2321_v52 = vadd.f32 %v4261_v61, %v2285_v11 }
 0x2ce   : > { %v1888_v59 = vpop.f32.mrf.mxu3 }
 0x2cf   : > { %v2353_v12 = vmax.f32 %v2321_v52, 0.0  ;;  %v1974_v9 = vadd.f32 %v1888_v59, %v4059_v41 }
 0x2d0   : > { %v2206_v49 = vpop.f32.mrf.mxu1 }
 0x2d1   : > { %2385 = vst.msk [vmem:[%s4273_s28 + $0x20] sm:$0xff] %vm262_vm1, %v2353_v12  ;;  %v2130_v47 = vadd.f32 %v4182_v44, %v1974_v9  ;;  %v1696_v12 = vadd.f32 %v4297_v1, %v4656_v2 }
 0x2d3   : > { %v2286_v16 = vadd.f32 %v2200_v39, %v2130_v47  ;;  %2737 = vmatmul.msk.f32.gmra.mxu3 %vm262_vm1, %v4026_v62  ;;  %2806 = vmatmul.msk.f32.gmra.mxu1 %vm262_vm1, %v4121_v33  ;;  %v4342_v62 = vpop.f32.mrf.mxu2  ;;  %v4348_v29 = vpop.f32.mrf.mxu0 }
 0x2d5   : > { %v2322_v38 = vadd.f32 %v4261_v61, %v2286_v16 }
 0x2d6   : > { %v1891_v35 = vpop.f32.mrf.mxu3 }
 0x2d7   : > { %v2354_v41 = vmax.f32 %v2322_v38, 0.0  ;;  %v1975_v24 = vadd.f32 %v1891_v35, %v4079_v46 }
 0x2d8   : > { %v2209_v10 = vpop.f32.mrf.mxu1 }
 0x2d9   : > { %2386 = vst.msk [vmem:[%s4273_s28 + $0x28] sm:$0xff] %vm262_vm1, %v2354_v41  ;;  %v2131_v44 = vadd.f32 %v4199_v5, %v1975_v24 }
 0x2db   : > { %v2287_v6 = vadd.f32 %v2203_v31, %v2131_v44  ;;  %2738 = vmatmul.msk.f32.gmra.mxu3 %vm262_vm1, %v4044_v26  ;;  %2807 = vmatmul.msk.f32.gmra.mxu1 %vm262_vm1, %v4136_v53  ;;  %v2068_v59 = vpop.f32.mrf.mxu0 }
 0x2dd   : > { %v2323_v43 = vadd.f32 %v4261_v61, %v2287_v6 }
 0x2de   : > { %v1894_v23 = vpop.f32.mrf.mxu3 }
 0x2df   : > { %v2355_v39 = vmax.f32 %v2323_v43, 0.0  ;;  %v1976_v46 = vadd.f32 %v1894_v23, %v4097_v25  ;;  %v1630_v25 = vpop.f32.mrf.mxu2 }
 0x2e0   : > { %v2212_v30 = vpop.f32.mrf.mxu1 }
 0x2e1   : > { %2387 = vst.msk [vmem:[%s4273_s28 + $0x30] sm:$0xff] %vm262_vm1, %v2355_v39  ;;  %v2132_v5 = vadd.f32 %v4219_v36, %v1976_v46 }
 0x2e3   : > { %v2288_v26 = vadd.f32 %v2206_v49, %v2132_v5  ;;  %2739 = vmatmul.msk.f32.gmra.mxu3 %vm262_vm1, %v4064_v28  ;;  %2808 = vmatmul.msk.f32.gmra.mxu1 %vm262_vm1, %v4153_v42  ;;  %v2071_v24 = vpop.f32.mrf.mxu0 }
 0x2e5   : > { %v2324_v56 = vadd.f32 %v4261_v61, %v2288_v26 }
 0x2e6   : > { %v1897_v14 = vpop.f32.mrf.mxu3 }
 0x2e7   : > { %v2356_v31 = vmax.f32 %v2324_v56, 0.0  ;;  %v1977_v11 = vadd.f32 %v1897_v14, %v1695_v55  ;;  %v1633_v38 = vpop.f32.mrf.mxu2 }
 0x2e8   : > { %v2215_v52 = vpop.f32.mrf.mxu1 }
 0x2e9   : > { %2388 = vst.msk [vmem:[%s4273_s28 + $0x38] sm:$0xff] %vm262_vm1, %v2356_v31  ;;  %v2133_v36 = vadd.f32 %v4287_v34, %v1977_v11 }
 0x2eb   : > { %v2289_v28 = vadd.f32 %v2209_v10, %v2133_v36  ;;  %2740 = vmatmul.msk.f32.gmra.mxu3 %vm262_vm1, %v4084_v21  ;;  %2809 = vmatmul.msk.f32.gmra.mxu1 %vm262_vm1, %v4170_v51  ;;  %v4657_v21 = vld [vmem:[#allocation20_spill] sm:$0xff]  ;;  %v2074_v26 = vpop.f32.mrf.mxu0 }
 0x2ec   : > { %v1697_v1 = vadd.f32 %v4311_v0, %v4657_v21  ;;  %v4658_v0 = vld [vmem:[#allocation23_spill] sm:$0xff] }
 0x2ed   : > { %v2325_v9 = vadd.f32 %v4261_v61, %v2289_v28  ;;  %v1698_v46 = vadd.f32 %v4327_v7, %v4658_v0 }
 0x2ee   : > { %v1900_v47 = vpop.f32.mrf.mxu3 }
 0x2ef   : > { %v2357_v49 = vmax.f32 %v2325_v9, 0.0  ;;  %v1978_v16 = vadd.f32 %v1900_v47, %v1696_v12  ;;  %v1636_v39 = vpop.f32.mrf.mxu2 }
 0x2f0   : > { %v2218_v35 = vpop.f32.mrf.mxu1 }
 0x2f1   : > { %2389 = vst.msk [vmem:[%s4273_s28 + $0x40] sm:$0xff] %vm262_vm1, %v2357_v49  ;;  %v2134_v34 = vadd.f32 %v4303_v3, %v1978_v16 }
 0x2f3   : > { %v2290_v41 = vadd.f32 %v2212_v30, %v2134_v34  ;;  %2741 = vmatmul.msk.f32.gmra.mxu3 %vm262_vm1, %v4104_v45  ;;  %2810 = vmatmul.msk.f32.gmra.mxu1 %vm262_vm1, %v4187_v32  ;;  %v2077_v28 = vpop.f32.mrf.mxu0 }
 0x2f5   : > { %v2326_v44 = vadd.f32 %v4261_v61, %v2290_v41  ;;  %v1754_v41 = vld [vmem:[#allocation2 + $0x1a2] sm:$0xff] }
 0x2f6   : > { %v1903_v10 = vpop.f32.mrf.mxu3 }
 0x2f7   : > { %v2358_v6 = vmax.f32 %v2326_v44, 0.0  ;;  %v1979_v43 = vadd.f32 %v1903_v10, %v1697_v1 }
 0x2f8   : > { %v2221_v23 = vpop.f32.mrf.mxu1 }
 0x2f9   : > { %2390 = vst.msk [vmem:[%s4273_s28 + $0x48] sm:$0xff] %vm262_vm1, %v2358_v6  ;;  %v2135_v3 = vadd.f32 %v4320_v50, %v1979_v43 }
 0x2fb   : > { %v2291_v45 = vadd.f32 %v2215_v52, %v2135_v3  ;;  %2742 = vmatmul.msk.f32.gmra.mxu3 %vm262_vm1, %v4121_v33  ;;  %2811 = vmatmul.msk.f32.gmra.mxu1 %vm262_vm1, %v4203_v57  ;;  %v1639_v33 = vpop.f32.mrf.mxu2  ;;  %v4659_v57 = vld [vmem:[#allocation29_spill] sm:$0xff]  ;;  %v2080_v21 = vpop.f32.mrf.mxu0 }
 0x2fc   : > { %v1699_v7 = vadd.f32 %v4342_v62, %v4659_v57 }
 0x2fd   : > { %v2327_v5 = vadd.f32 %v4261_v61, %v2291_v45 }
 0x2fe   : > { %v1906_v30 = vpop.f32.mrf.mxu3 }
 0x2ff   : > { %v2359_v8 = vmax.f32 %v2327_v5, 0.0  ;;  %v1980_v55 = vadd.f32 %v1906_v30, %v1698_v46 }
 0x300   : > { %v2224_v56 = vpop.f32.mrf.mxu1 }
 0x301   : > { %2391 = vst.msk [vmem:[%s4273_s28 + $0x50] sm:$0xff] %vm262_vm1, %v2359_v8  ;;  %v2136_v50 = vadd.f32 %v4334_v58, %v1980_v55 }
 0x303   : > { %v2292_v14 = vadd.f32 %v2218_v35, %v2136_v50  ;;  %2743 = vmatmul.msk.f32.gmra.mxu3 %vm262_vm1, %v4136_v53  ;;  %2812 = vmatmul.msk.f32.gmra.mxu1 %vm262_vm1, %v4217_v60  ;;  %v1753_v53 = vld [vmem:[#allocation2 + $0x19a] sm:$0xff]  ;;  %v4660_v60 = vld [vmem:[#allocation34_spill] sm:$0xff]  ;;  %v1642_v47 = vpop.f32.mrf.mxu2  ;;  %v2083_v0 = vpop.f32.mrf.mxu0 }
 0x304   : > { %v1700_v62 = vadd.f32 %v1630_v25, %v4660_v60 }
 0x305   : > { %v2328_v31 = vadd.f32 %v4261_v61, %v2292_v14 }
 0x306   : > { %v1909_v11 = vpop.f32.mrf.mxu3 }
 0x307   : > { %v2360_v36 = vmax.f32 %v2328_v31, 0.0  ;;  %v1981_v52 = vadd.f32 %v1909_v11, %v1699_v7 }
 0x308   : > { %v2227_v2 = vpop.f32.mrf.mxu1 }
 0x309   : > { %2392 = vst.msk [vmem:[%s4273_s28 + $0x58] sm:$0xff] %vm262_vm1, %v2360_v36  ;;  %v2137_v58 = vadd.f32 %v4348_v29, %v1981_v52 }
 0x30b   : > { %v2293_v12 = vadd.f32 %v2221_v23, %v2137_v58  ;;  %2744 = vmatmul.msk.f32.gmra.mxu3 %vm262_vm1, %v4153_v42  ;;  %2813 = vmatmul.msk.f32.gmra.mxu1 %vm262_vm1, %v1753_v53  ;;  %v4661_v42 = vld [vmem:[#allocation37_spill] sm:$0xff]  ;;  %v1645_v3 = vpop.f32.mrf.mxu2 }
 0x30c   : > { %v1701_v25 = vadd.f32 %v1633_v38, %v4661_v42 }
 0x30d   : > { %v2329_v9 = vadd.f32 %v4261_v61, %v2293_v12 }
 0x30e   : > { %v1912_v49 = vpop.f32.mrf.mxu3 }
 0x30f   : > { %v2361_v16 = vmax.f32 %v2329_v9, 0.0  ;;  %v1982_v34 = vadd.f32 %v1912_v49, %v1700_v62  ;;  %v1705_v62 = vadd.f32 %v1645_v3, %v4052_v40 }
 0x310   : > { %v2230_v35 = vpop.f32.mrf.mxu1 }
 0x311   : > { %2393 = vst.msk [vmem:[%s4273_s28 + $0x60] sm:$0xff] %vm262_vm1, %v2361_v16  ;;  %v2138_v29 = vadd.f32 %v2068_v59, %v1982_v34 }
 0x313   : > { %v2294_v1 = vadd.f32 %v2224_v56, %v2138_v29  ;;  %2745 = vmatmul.msk.f32.gmra.mxu3 %vm262_vm1, %v4170_v51  ;;  %2814 = vmatmul.msk.f32.gmra.mxu1 %vm262_vm1, %v1754_v41  ;;  %v1702_v51 = vadd.f32 %v1636_v39, %v3993_v17  ;;  %v1648_v50 = vpop.f32.mrf.mxu2  ;;  %v1703_v56 = vadd.f32 %v1639_v33, %v4012_v48  ;;  %v2086_v17 = vpop.f32.mrf.mxu0 }
 0x314   : > { %v1706_v41 = vadd.f32 %v1648_v50, %v4070_v63 }
 0x315   : > { %v2330_v44 = vadd.f32 %v4261_v61, %v2294_v1 }
 0x316   : > { %v1915_v10 = vpop.f32.mrf.mxu3 }
 0x317   : > { %v2362_v6 = vmax.f32 %v2330_v44, 0.0  ;;  %v1983_v43 = vadd.f32 %v1915_v10, %v1701_v25 }
 0x318   : > { %v2233_v23 = vpop.f32.mrf.mxu1 }
 0x319   : > { %2394 = vst.msk [vmem:[%s4273_s28 + $0x68] sm:$0xff] %vm262_vm1, %v2362_v6  ;;  %v2139_v59 = vadd.f32 %v2071_v24, %v1983_v43 }
 0x31b   : > { %v2295_v45 = vadd.f32 %v2227_v2, %v2139_v59  ;;  %2746 = vmatmul.msk.f32.gmra.mxu3 %vm262_vm1, %v4187_v32  ;;  %v1651_v36 = vpop.f32.mrf.mxu2  ;;  %v2089_v2 = vpop.f32.mrf.mxu0 }
 0x31c   : > { %v1707_v43 = vadd.f32 %v1651_v36, %v4090_v15 }
 0x31d   : > { %v2331_v38 = vadd.f32 %v4261_v61, %v2295_v45 }
 0x31e   : > { %v1918_v46 = vpop.f32.mrf.mxu3 }
 0x31f   : > { %v2363_v5 = vmax.f32 %v2331_v38, 0.0  ;;  %v1984_v30 = vadd.f32 %v1918_v46, %v1702_v51 }
 0x320   : > { %v2236_v55 = vpop.f32.mrf.mxu1 }
 0x321   : > { %2395 = vst.msk [vmem:[%s4273_s28 + $0x70] sm:$0xff] %vm262_vm1, %v2363_v5  ;;  %v2140_v8 = vadd.f32 %v2074_v26, %v1984_v30  ;;  %v1704_v26 = vadd.f32 %v1642_v47, %v4032_v18 }
 0x323   : > { %v2296_v24 = vadd.f32 %v2230_v35, %v2140_v8  ;;  %v1654_v9 = vpop.f32.mrf.mxu2  ;;  %v2092_v29 = vpop.f32.mrf.mxu0 }
 0x324   : > { %v1708_v5 = vadd.f32 %v1654_v9, %v4110_v20 }
 0x325   : > { %v2332_v14 = vadd.f32 %v4261_v61, %v2296_v24 }
 0x326   : > { %v1921_v32 = vpop.f32.mrf.mxu3 }
 0x327   : > { %v2364_v39 = vmax.f32 %v2332_v14, 0.0  ;;  %v1985_v57 = vadd.f32 %v1921_v32, %v1703_v56 }
 0x328   : > { %v2239_v31 = vpop.f32.mrf.mxu1 }
 0x329   : > { %2396 = vst.msk [vmem:[%s4273_s28 + $0x78] sm:$0xff] %vm262_vm1, %v2364_v39  ;;  %v2141_v7 = vadd.f32 %v2077_v28, %v1985_v57 }
 0x32b   : > { %v2297_v11 = vadd.f32 %v2233_v23, %v2141_v7  ;;  %v1657_v25 = vpop.f32.mrf.mxu2  ;;  %v2095_v3 = vpop.f32.mrf.mxu0 }
 0x32d   : > { %v2333_v52 = vadd.f32 %v4261_v61, %v2297_v11 }
 0x32e   : > { %v1924_v58 = vpop.f32.mrf.mxu3 }
 0x32f   : > { %v2365_v48 = vmax.f32 %v2333_v52, 0.0  ;;  %v1986_v33 = vadd.f32 %v1924_v58, %v1704_v26 }
 0x330   : > { %v2242_v12 = vpop.f32.mrf.mxu1 }
 0x331   : > { %2397 = vst.msk [vmem:[%s4273_s28 + $0x80] sm:$0xff] %vm262_vm1, %v2365_v48  ;;  %v2142_v53 = vadd.f32 %v2080_v21, %v1986_v33 }
 0x333   : > { %v2298_v60 = vadd.f32 %v2236_v55, %v2142_v53  ;;  %v1660_v38 = vpop.f32.mrf.mxu2  ;;  %v2098_v15 = vpop.f32.mrf.mxu0 }
 0x334   : > { %v1710_v52 = vadd.f32 %v1660_v38, %v4144_v4  ;;  %v4663_v38 = vld [vmem:[#allocation38_spill] sm:$0xff] }
 0x335   : > { %v2334_v28 = vadd.f32 %v4261_v61, %v2298_v60 }
 0x336   : > { %v1927_v49 = vpop.f32.mrf.mxu3 }
 0x337   : > { %v2366_v18 = vmax.f32 %v2334_v28, 0.0  ;;  %v1987_v47 = vadd.f32 %v1927_v49, %v1705_v62 }
 0x338   : > { %v2245_v34 = vpop.f32.mrf.mxu1 }
 0x339   : > { %2398 = vst.msk [vmem:[%s4273_s28 + $0x88] sm:$0xff] %vm262_vm1, %v2366_v18  ;;  %v2143_v16 = vadd.f32 %v2083_v0, %v1987_v47 }
 0x33b   : > { %v2299_v35 = vadd.f32 %v2239_v31, %v2143_v16  ;;  %v1663_v32 = vpop.f32.mrf.mxu2  ;;  %v2101_v31 = vpop.f32.mrf.mxu0 }
 0x33c   : > { %v1711_v62 = vadd.f32 %v1663_v32, %v4159_v27 }
 0x33d   : > { %v2335_v21 = vadd.f32 %v4261_v61, %v2299_v35 }
 0x33e   : > { %v1930_v1 = vpop.f32.mrf.mxu3 }
 0x33f   : > { %v2367_v40 = vmax.f32 %v2335_v21, 0.0  ;;  %v1988_v42 = vadd.f32 %v1930_v1, %v1706_v41 }
 0x340   : > { %v2248_v10 = vpop.f32.mrf.mxu1 }
 0x341   : > { %2399 = vst.msk [vmem:[%s4273_s28 + $0x90] sm:$0xff] %vm262_vm1, %v2367_v40  ;;  %v2144_v44 = vadd.f32 %v2086_v17, %v1988_v42  ;;  %v1709_v17 = vadd.f32 %v1657_v25, %v4127_v13 }
 0x343   : > { %v2300_v6 = vadd.f32 %v2242_v12, %v2144_v44  ;;  %v1666_v48 = vpop.f32.mrf.mxu2  ;;  %v2104_v12 = vpop.f32.mrf.mxu0 }
 0x345   : > { %v2336_v59 = vadd.f32 %v4261_v61, %v2300_v6 }
 0x346   : > { %v1933_v23 = vpop.f32.mrf.mxu3 }
 0x347   : > { %v2368_v63 = vmax.f32 %v2336_v59, 0.0  ;;  %v1989_v45 = vadd.f32 %v1933_v23, %v1707_v43 }
 0x348   : > { %v2251_v0 = vpop.f32.mrf.mxu1 }
 0x349   : > { %2400 = vst.msk [vmem:[%s4273_s28 + $0x98] sm:$0xff] %vm262_vm1, %v2368_v63  ;;  %v2145_v51 = vadd.f32 %v2089_v2, %v1989_v45 }
 0x34b   : > { %v2301_v46 = vadd.f32 %v2245_v34, %v2145_v51  ;;  %v1669_v47 = vpop.f32.mrf.mxu2  ;;  %v2107_v35 = vpop.f32.mrf.mxu0 }
 0x34d   : > { %v2337_v30 = vadd.f32 %v4261_v61, %v2301_v46 }
 0x34e   : > { %v1936_v8 = vpop.f32.mrf.mxu3 }
 0x34f   : > { %v2369_v55 = vmax.f32 %v2337_v30, 0.0  ;;  %v1990_v50 = vadd.f32 %v1936_v8, %v1708_v5 }
 0x350   : > { %v2254_v56 = vpop.f32.mrf.mxu1 }
 0x351   : > { %2401 = vst.msk [vmem:[%s4273_s28 + $0xa0] sm:$0xff] %vm262_vm1, %v2369_v55  ;;  %v2146_v24 = vadd.f32 %v2092_v29, %v1990_v50  ;;  %v1712_v29 = vadd.f32 %v1666_v48, %v4176_v22 }
 0x353   : > { %v2302_v14 = vadd.f32 %v2248_v10, %v2146_v24  ;;  %v1672_v25 = vpop.f32.mrf.mxu2  ;;  %v4662_v10 = vld [vmem:[#allocation35_spill] sm:$0xff]  ;;  %v2110_v22 = vpop.f32.mrf.mxu0 }
 0x354   : > { %v1713_v6 = vadd.f32 %v1669_v47, %v4662_v10  ;;  %v1714_v46 = vadd.f32 %v1672_v25, %v4663_v38 }
 0x355   : > { %v2338_v39 = vadd.f32 %v4261_v61, %v2302_v14  ;;  %v4664_v14 = vld [vmem:[#allocation4_spill] sm:$0xff] }
 0x356   : > { %v1939_v57 = vpop.f32.mrf.mxu3 }
 0x357   : > { %v2370_v20 = vmax.f32 %v2338_v39, 0.0  ;;  %v1991_v7 = vadd.f32 %v1939_v57, %v1709_v17 }
 0x358   : > { %v2257_v26 = vpop.f32.mrf.mxu1 }
 0x359   : > { %2402 = vst.msk [vmem:[%s4273_s28 + $0xa8] sm:$0xff] %vm262_vm1, %v2370_v20  ;;  %v2147_v11 = vadd.f32 %v2095_v3, %v1991_v7 }
 0x35b   : > { %v2303_v36 = vadd.f32 %v2251_v0, %v2147_v11  ;;  %v1675_v0 = vpop.f32.mrf.mxu2  ;;  %v2113_v55 = vpop.f32.mrf.mxu0 }
 0x35c   : > { %v1715_v32 = vadd.f32 %v1675_v0, %v4664_v14 }
 0x35d   : > { %v2339_v58 = vadd.f32 %v4261_v61, %v2303_v36 }
 0x35e   : > { %v1942_v33 = vpop.f32.mrf.mxu3 }
 0x35f   : > { %v2371_v13 = vmax.f32 %v2339_v58, 0.0  ;;  %v1992_v2 = vadd.f32 %v1942_v33, %v1710_v52 }
 0x360   : > { %v2260_v9 = vpop.f32.mrf.mxu1 }
 0x361   : > { %2403 = vst.msk [vmem:[%s4273_s28 + $0xb0] sm:$0xff] %vm262_vm1, %v2371_v13  ;;  %v2148_v53 = vadd.f32 %v2098_v15, %v1992_v2 }
 0x363   : > { %v2304_v60 = vadd.f32 %v2254_v56, %v2148_v53  ;;  %v1678_v39 = vpop.f32.mrf.mxu2  ;;  %v2116_v11 = vpop.f32.mrf.mxu0 }
 0x365   : > { %v2340_v28 = vadd.f32 %v4261_v61, %v2304_v60 }
 0x366   : > { %v1945_v49 = vpop.f32.mrf.mxu3 }
 0x367   : > { %v2372_v4 = vmax.f32 %v2340_v28, 0.0  ;;  %v1993_v18 = vadd.f32 %v1945_v49, %v1711_v62 }
 0x368   : > { %v2263_v40 = vpop.f32.mrf.mxu1 }
 0x369   : > { %2404 = vst.msk [vmem:[%s4273_s28 + $0xb8] sm:$0xff] %vm262_vm1, %v2372_v4  ;;  %v2149_v16 = vadd.f32 %v2101_v31, %v1993_v18 }
 0x36b   : > { %v2305_v34 = vadd.f32 %v2257_v26, %v2149_v16  ;;  %v1716_v26 = vadd.f32 %v1678_v39, %v4234_v37  ;;  %v1681_v2 = vpop.f32.mrf.mxu2  ;;  %v2119_v60 = vpop.f32.mrf.mxu0 }
 0x36c   : > { %v1717_v62 = vadd.f32 %v1681_v2, %v4243_v54 }
 0x36d   : > { %v2341_v41 = vadd.f32 %v4261_v61, %v2305_v34 }
 0x36e   : > { %v1948_v21 = vpop.f32.mrf.mxu3 }
 0x36f   : > { %v2373_v27 = vmax.f32 %v2341_v41, 0.0  ;;  %v1994_v1 = vadd.f32 %v1948_v21, %v1712_v29 }
 0x370   : > { %v2266_v45 = vpop.f32.mrf.mxu1 }
 0x371   : > { %2405 = vst.msk [vmem:[%s4273_s28 + $0xc0] sm:$0xff] %vm262_vm1, %v2373_v27  ;;  %v2150_v42 = vadd.f32 %v2104_v12, %v1994_v1 }
 0x373   : > { %v2306_v44 = vadd.f32 %v2260_v9, %v2150_v42  ;;  %v1684_v47 = vpop.f32.mrf.mxu2  ;;  %v2122_v21 = vpop.f32.mrf.mxu0 }
 0x374   : > { %v1718_v34 = vadd.f32 %v1684_v47, %v4252_v19 }
 0x375   : > { %v2342_v43 = vadd.f32 %v4261_v61, %v2306_v44 }
 0x376   : > { %v1951_v3 = vpop.f32.mrf.mxu3 }
 0x377   : > { %v2374_v59 = vmax.f32 %v2342_v43, 0.0  ;;  %v1995_v23 = vadd.f32 %v1951_v3, %v1713_v6 }
 0x378   : > { %v2269_v56 = vpop.f32.mrf.mxu1 }
 0x379   : > { %2406 = vst.msk [vmem:[%s4273_s28 + $0xc8] sm:$0xff] %vm262_vm1, %v2374_v59  ;;  %v2151_v63 = vadd.f32 %v2107_v35, %v1995_v23 }
 0x37b   : > { %v2307_v51 = vadd.f32 %v2263_v40, %v2151_v63 }
 0x37d   : > { %v2343_v5 = vadd.f32 %v4261_v61, %v2307_v51 }
 0x37e   : > { %v1954_v30 = vpop.f32.mrf.mxu3 }
 0x37f   : > { %v2375_v8 = vmax.f32 %v2343_v5, 0.0  ;;  %v1996_v15 = vadd.f32 %v1954_v30, %v1714_v46 }
 0x380   : > { %v2272_v58 = vpop.f32.mrf.mxu1 }
 0x381   : > { %2407 = vst.msk [vmem:[%s4273_s28 + $0xd0] sm:$0xff] %vm262_vm1, %v2375_v8  ;;  %v2152_v50 = vadd.f32 %v2110_v22, %v1996_v15 }
 0x383   : > { %v2308_v24 = vadd.f32 %v2266_v45, %v2152_v50 }
 0x385   : > { %v2344_v17 = vadd.f32 %v4261_v61, %v2308_v24 }
 0x386   : > { %v1957_v57 = vpop.f32.mrf.mxu3 }
 0x387   : > { %v2376_v20 = vmax.f32 %v2344_v17, 0.0  ;;  %v1997_v7 = vadd.f32 %v1957_v57, %v1715_v32 }
 0x388   : > { %v2275_v37 = vpop.f32.mrf.mxu1 }
 0x389   : > { %2408 = vst.msk [vmem:[%s4273_s28 + $0xd8] sm:$0xff] %vm262_vm1, %v2376_v20  ;;  %v2153_v31 = vadd.f32 %v2113_v55, %v1997_v7 }
 0x38b   : > { %v2309_v36 = vadd.f32 %v2269_v56, %v2153_v31 }
 0x38d   : > { %v2345_v52 = vadd.f32 %v4261_v61, %v2309_v36 }
 0x38e   : > { %v1960_v48 = vpop.f32.mrf.mxu3 }
 0x38f   : > { %v2377_v33 = vmax.f32 %v2345_v52, 0.0  ;;  %v1998_v13 = vadd.f32 %v1960_v48, %v1716_v26 }
 0x390   : > { %v2278_v27 = vpop.f32.mrf.mxu1 }
 0x391   : > { %2409 = vst.msk [vmem:[%s4273_s28 + $0xe0] sm:$0xff] %vm262_vm1, %v2377_v33  ;;  %v2154_v53 = vadd.f32 %v2116_v11, %v1998_v13 }
 0x393   : > { %v2310_v12 = vadd.f32 %v2272_v58, %v2154_v53 }
 0x395   : > { %v2346_v28 = vadd.f32 %v4261_v61, %v2310_v12 }
 0x396   : > { %v1963_v9 = vpop.f32.mrf.mxu3 }
 0x397   : > { %v2378_v49 = vmax.f32 %v2346_v28, 0.0  ;;  %v1999_v4 = vadd.f32 %v1963_v9, %v1717_v62 }
 0x399   : > { %2410 = vst.msk [vmem:[%s4273_s28 + $0xe8] sm:$0xff] %vm262_vm1, %v2378_v49  ;;  %v2155_v18 = vadd.f32 %v2119_v60, %v1999_v4 }
 0x39b   : > { %v2311_v16 = vadd.f32 %v2275_v37, %v2155_v18 }
 0x39d   : > { %v2347_v29 = vadd.f32 %v4261_v61, %v2311_v16 }
 0x39e   : > { %v1966_v35 = vpop.f32.mrf.mxu3 }
 0x39f   : > { %v2379_v41 = vmax.f32 %v2347_v29, 0.0  ;;  %v2000_v54 = vadd.f32 %v1966_v35, %v1718_v34 }
 0x3a1   : > { %2411 = vst.msk [vmem:[%s4273_s28 + $0xf0] sm:$0xff] %vm262_vm1, %v2379_v41  ;;  %v2156_v1 = vadd.f32 %v2122_v21, %v2000_v54 }
 0x3a3   : > { %v2312_v40 = vadd.f32 %v2278_v27, %v2156_v1 }
 0x3a5   : > { %v2348_v42 = vadd.f32 %v4261_v61, %v2312_v40 }
 0x3a7   : > { %v2380_v25 = vmax.f32 %v2348_v42, 0.0 }
 0x3a9   : > { %2412 = vst.msk [vmem:[%s4273_s28 + $0xf8] sm:$0xff] %vm262_vm1, %v2380_v25 }
 0x3aa PF: > { %s15_s18 = sadd.s32 1, %s2838_s18  }
 0x3ab   : > { %p12_p4 = scmp.ge.s32.totalorder %s15_s18, 4  }
 0x3ad   :  { %14 = sbr.rel (!%p12_p4) target bundleno = 1 (0x1), region = 79 }

</bundles_post_ra>
